<compile_context>
chip_gen: v6e
topology: v6e:2x2x1
jax: 0.10.0
libtpu: 0.0.40
codegen_flags: <defaults>
</compile_context>

<pallas_src>
import math
import jax
import jax.numpy as jnp
from jax.experimental import pallas as pl
from jax.experimental.pallas import tpu as pltpu

# ---- model hyper-params (small, consistent with the module's __init__) ----
EMB = 32          # emb_dim
HEADS = 2         # args.n_head
HEAD_DIM = EMB // HEADS
FE = 4            # args.n_fe (forward_expansion)
N_LAYER = 2       # args.n_layer
SEQ = 8           # args.sentence_len
BATCH = 2
VOCAB = 100
OUT_DIM = 2       # output_dim
MAX_LEN = 16
EPS = 1e-5        # nn.LayerNorm default
NEG_INF = -1e20   # masked_fill value in the reference encoder

# ---- packed-slab layout (all offsets 8-sublane aligned) ----
POS_OFF = 104                    # word_emb occupies rows [0, VOCAB), padded to 104
WOUT_OFF = POS_OFF + MAX_LEN     # 120: w_out stored as (EMB, OUT_DIM)
MISC_ROWS = WOUT_OFF + EMB       # 152
VOCAB_PAD = POS_OFF              # one-hot width (extra rows are zero)

WMAT_ROWS = 224                  # per-layer matrix slab rows (x 128 lanes)
QKV_R, WO_R, W1_R, W2_R = 0, 32, 64, 96

WVEC_ROWS = 8                    # per-layer vector slab rows (x 128 lanes)
R_BO, R_G1, R_BE1, R_B1, R_B2, R_G2, R_BE2 = 0, 1, 2, 3, 4, 5, 6


def _layernorm(x, g, b):
    mu = jnp.mean(x, axis=-1, keepdims=True)
    var = jnp.mean((x - mu) ** 2, axis=-1, keepdims=True)
    return (x - mu) * jax.lax.rsqrt(var + EPS) * g + b


def fused_forward_kernel(tok_ref, lab_ref, misc_ref, wmat_ref, wvec_ref,
                         pred_ref, loss_ref):
    B, S = tok_ref.shape
    E = EMB
    HD = HEAD_DIM
    BS = B * S
    ZB = HEADS * B                     # head-major z-batch for attention

    tok = tok_ref[...]                                               # (B, S) int32

    # --- fused embedding gather (one-hot matmul) + positional embedding ---
    iota_v = jax.lax.broadcasted_iota(jnp.int32, (B, S, VOCAB_PAD), 2)
    onehot = (tok[:, :, None] == iota_v).astype(jnp.float32).reshape(BS, VOCAB_PAD)
    word_emb = misc_ref[0:VOCAB_PAD, :]                              # (104, E), rows >= VOCAB are 0
    pos_emb = misc_ref[POS_OFF:POS_OFF + S, :]                       # (S, E)
    xf = jnp.dot(onehot, word_emb, preferred_element_type=jnp.float32)
    xf = xf + jnp.concatenate([pos_emb] * B, axis=0)                 # (BS, E)

    # --- additive key-padding mask, built once and broadcast once (hoisted) ---
    mask_row = jnp.where(tok != 0, 0.0, NEG_INF).astype(jnp.float32)          # (B, S)
    mask_z = jnp.concatenate([mask_row] * HEADS, axis=0)                      # (ZB, S)
    amask_z = jnp.broadcast_to(mask_z[:, None, :], (ZB, S, S))                # (ZB, S, S)

    scale = 1.0 / math.sqrt(EMB)       # reference scales energy by sqrt(emb_dim)

    for l in range(N_LAYER):           # unrolled: whole model in one call
        wqkv = wmat_ref[l, QKV_R:QKV_R + E, 0:3 * E]                 # (E, 3E)
        wo   = wmat_ref[l, WO_R:WO_R + E, 0:E]                       # (E, E)
        w1   = wmat_ref[l, W1_R:W1_R + E, 0:FE * E]                  # (E, 4E)
        w2   = wmat_ref[l, W2_R:W2_R + FE * E, 0:E]                  # (4E, E)
        bo   = wvec_ref[l, R_BO:R_BO + 1, 0:E]
        g1   = wvec_ref[l, R_G1:R_G1 + 1, 0:E]
        be1  = wvec_ref[l, R_BE1:R_BE1 + 1, 0:E]
        b1   = wvec_ref[l, R_B1:R_B1 + 1, 0:FE * E]
        b2   = wvec_ref[l, R_B2:R_B2 + 1, 0:E]
        g2   = wvec_ref[l, R_G2:R_G2 + 1, 0:E]
        be2  = wvec_ref[l, R_BE2:R_BE2 + 1, 0:E]

        # --- multi-head self-attention, heads batched along z = HEADS*B ---
        qkv = jnp.dot(xf, wqkv, preferred_element_type=jnp.float32)  # (BS, 3E)

        # head-major sublane stacking, then split into the z-batch: z = h*B + b
        q_z = jnp.concatenate(
            [qkv[:, h * HD:(h + 1) * HD] for h in range(HEADS)], axis=0).reshape(ZB, S, HD)
        k_z = jnp.concatenate(
            [qkv[:, E + h * HD:E + (h + 1) * HD] for h in range(HEADS)], axis=0).reshape(ZB, S, HD)
        v_z = jnp.concatenate(
            [qkv[:, 2 * E + h * HD:2 * E + (h + 1) * HD] for h in range(HEADS)], axis=0).reshape(ZB, S, HD)

        scores = jnp.einsum('zqd,zkd->zqk', q_z, k_z,
                            preferred_element_type=jnp.float32) * scale + amask_z
        m = jnp.max(scores, axis=-1, keepdims=True)
        e = jnp.exp(scores - m)
        attn = e * pl.reciprocal(jnp.sum(e, axis=-1, keepdims=True), approx=True)
        ctx_z = jnp.einsum('zqk,zkd->zqd', attn, v_z,
                           preferred_element_type=jnp.float32)       # (ZB, S, HD)

        # un-batch heads back onto the lane axis and do ONE full output projection
        ctx2 = ctx_z.reshape(HEADS * BS, HD)
        ctx = jnp.concatenate(
            [ctx2[h * BS:(h + 1) * BS, :] for h in range(HEADS)], axis=1)     # (BS, E)
        att = jnp.dot(ctx, wo, preferred_element_type=jnp.float32) + bo

        # --- add & norm 1 ---
        h1 = _layernorm(att + xf, g1, be1)

        # --- feed-forward (Linear -> ReLU -> Linear) ---
        ff = jnp.dot(h1, w1, preferred_element_type=jnp.float32) + b1
        ff = jnp.maximum(ff, 0.0)
        ff = jnp.dot(ff, w2, preferred_element_type=jnp.float32) + b2

        # --- add & norm 2 ---
        xf = _layernorm(ff + h1, g2, be2)

    # --- classifier epilogue (CLS token -> linear -> softmax), exact softmax ---
    cls = xf.reshape(B, S, E)[:, 0, :]                               # (B, E)
    wout = misc_ref[WOUT_OFF:WOUT_OFF + E, 0:OUT_DIM]                # (E, OUT), pre-transposed
    logits = jnp.dot(cls, wout, preferred_element_type=jnp.float32)
    m = jnp.max(logits, axis=-1, keepdims=True)
    e = jnp.exp(logits - m)
    pred = e / jnp.sum(e, axis=-1, keepdims=True)                    # exact (final output)
    pred_ref[...] = pred

    # --- fused CrossEntropyLoss on the (already softmax'd) prediction, as in the module ---
    pm = jnp.max(pred, axis=-1, keepdims=True)
    pe = jnp.exp(pred - pm)
    lse = pm + jnp.log(jnp.sum(pe, axis=-1, keepdims=True))
    logp = pred - lse                                                # log_softmax(pred)
    onehot_lab = (lab_ref[...] ==
                  jax.lax.broadcasted_iota(jnp.int32, (B, OUT_DIM), 1)).astype(jnp.float32)
    per_ex = jnp.sum(onehot_lab * logp, axis=-1, keepdims=True)      # (B, 1)
    loss_ref[...] = -jnp.sum(per_ex, axis=0, keepdims=True) * (1.0 / B)


def imdb_fused_forward(text, label, misc, wmat, wvec):
    """Single fused pallas_call: grid=(), everything VMEM-resident (~0.26 MiB total),
    5 input DMAs (tokens, labels, 3 weight slabs), 2 outputs (pred, loss)."""
    B = text.shape[0]
    vmem = pltpu.MemorySpace.VMEM
    return pl.pallas_call(
        fused_forward_kernel,
        out_shape=(jax.ShapeDtypeStruct((B, OUT_DIM), jnp.float32),
                   jax.ShapeDtypeStruct((1, 1), jnp.float32)),
        in_specs=[pl.BlockSpec(memory_space=vmem)] * 5,
        out_specs=(pl.BlockSpec(memory_space=vmem),
                   pl.BlockSpec(memory_space=vmem)),
        cost_estimate=pl.CostEstimate(flops=1_000_000, transcendentals=800,
                                      bytes_accessed=300_000),
    )(text, label, misc, wmat, wvec)


# --------------------------- parameter setup ---------------------------
def init_params(key):
    def nrm(k, shape, scale=0.02):
        return (scale * jax.random.normal(k, shape)).astype(jnp.float32)

    keys = jax.random.split(key, 3 + N_LAYER)
    word_emb = nrm(keys[0], (VOCAB, EMB))
    pos_emb = nrm(keys[1], (MAX_LEN, EMB))
    w_out = nrm(keys[2], (OUT_DIM, EMB))      # nn.Linear(emb_dim, output_dim, bias=False)

    # misc slab: word_emb | pos_emb | w_out^T (stored (E, OUT): no per-call transpose)
    misc = jnp.zeros((MISC_ROWS, EMB), jnp.float32)
    misc = misc.at[:VOCAB].set(word_emb)
    misc = misc.at[POS_OFF:POS_OFF + MAX_LEN].set(pos_emb)
    misc = misc.at[WOUT_OFF:WOUT_OFF + EMB, :OUT_DIM].set(w_out.T)

    # per-layer matrices packed into one (N_LAYER, 224, 128) slab; vectors into (N_LAYER, 8, 128)
    wmat = jnp.zeros((N_LAYER, WMAT_ROWS, 128), jnp.float32)
    wvec = jnp.zeros((N_LAYER, WVEC_ROWS, 128), jnp.float32)
    for l in range(N_LAYER):
        lk = jax.random.split(keys[3 + l], 9)
        wq = nrm(lk[0], (EMB, EMB))
        wk = nrm(lk[1], (EMB, EMB))
        wv = nrm(lk[2], (EMB, EMB))
        wmat = wmat.at[l, QKV_R:QKV_R + EMB, 0:3 * EMB].set(
            jnp.concatenate([wq, wk, wv], axis=1))                    # pre-fused (E, 3E)
        wmat = wmat.at[l, WO_R:WO_R + EMB, 0:EMB].set(nrm(lk[3], (EMB, EMB)))
        wmat = wmat.at[l, W1_R:W1_R + EMB, 0:FE * EMB].set(nrm(lk[5], (EMB, FE * EMB)))
        wmat = wmat.at[l, W2_R:W2_R + FE * EMB, 0:EMB].set(nrm(lk[7], (FE * EMB, EMB)))
        wvec = wvec.at[l, R_BO, 0:EMB].set(nrm(lk[4], (EMB,)))
        wvec = wvec.at[l, R_G1, 0:EMB].set(1.0)                       # LN1 gamma
        wvec = wvec.at[l, R_B1, 0:FE * EMB].set(nrm(lk[6], (FE * EMB,)))
        wvec = wvec.at[l, R_B2, 0:EMB].set(nrm(lk[8], (EMB,)))
        wvec = wvec.at[l, R_G2, 0:EMB].set(1.0)                       # LN2 gamma
        # R_BE1 / R_BE2 (LN betas) stay zero
    return misc, wmat, wvec


# ----------------------------- forward pass ----------------------------
def imdb_forward_train(text, label, params):
    """Equivalent of IMDB.forward(data, method='train'): softmax logits from the encoder
    CLS token, CrossEntropyLoss on the softmax'd prediction — all inside one kernel."""
    misc, wmat, wvec = params
    pred, loss = imdb_fused_forward(text.astype(jnp.int32),
                                    label.astype(jnp.int32)[:, None],
                                    misc, wmat, wvec)
    return [loss[0, 0]], pred


if __name__ == "__main__":
    key = jax.random.PRNGKey(0)
    k_tok, k_lab, k_par = jax.random.split(key, 3)

    text = jax.random.randint(k_tok, (BATCH, SEQ), 0, VOCAB, dtype=jnp.int32)
    label = jax.random.randint(k_lab, (BATCH,), 0, OUT_DIM, dtype=jnp.int32)
    params = init_params(k_par)

    fwd = jax.jit(imdb_forward_train)
    losses, prediction = fwd(text, label, params)
    jax.block_until_ready(losses[0])
    jax.block_until_ready(prediction)
    print("KERNEL_OK")
</pallas_src>

<mosaic_0001>
module attributes {stable_mosaic.version = 11 : i64} {
  func.func @fused_forward_kernel(%arg0: memref<2x8xi32, #tpu.memory_space<vmem>>, %arg1: memref<2x1xi32, #tpu.memory_space<vmem>>, %arg2: memref<152x32xf32, #tpu.memory_space<vmem>>, %arg3: memref<2x224x128xf32, #tpu.memory_space<vmem>>, %arg4: memref<2x8x128xf32, #tpu.memory_space<vmem>>, %arg5: memref<2x2xf32, #tpu.memory_space<vmem>>, %arg6: memref<1x1xf32, #tpu.memory_space<vmem>>) attributes {dimension_semantics = [], scalar_prefetch = 0 : i64, scratch_operands = 0 : i64, tpu.core_type = #tpu.core_type<tc>} {
    %c0 = arith.constant 0 : index
    %c0_0 = arith.constant 0 : index
    %0 = vector.load %arg0[%c0, %c0_0] : memref<2x8xi32, #tpu.memory_space<vmem>>, vector<2x8xi32>
    %1 = tpu.iota {dimensions = array<i32: 2>} : vector<2x8x104xi32>
    %2 = vector.shape_cast %0 : vector<2x8xi32> to vector<2x8x1xi32>
    %3 = vector.broadcast %2 : vector<2x8x1xi32> to vector<2x8x104xi32>
    %4 = arith.cmpi eq, %3, %1 : vector<2x8x104xi32>
    %5 = arith.extui %4 : vector<2x8x104xi1> to vector<2x8x104xi32>
    %6 = arith.sitofp %5 : vector<2x8x104xi32> to vector<2x8x104xf32>
    %7 = vector.shape_cast %6 : vector<2x8x104xf32> to vector<16x104xf32>
    %c0_1 = arith.constant 0 : index
    %c0_2 = arith.constant 0 : index
    %8 = vector.load %arg2[%c0_1, %c0_2] : memref<152x32xf32, #tpu.memory_space<vmem>>, vector<104x32xf32>
    %c104 = arith.constant 104 : index
    %c0_3 = arith.constant 0 : index
    %9 = vector.load %arg2[%c104, %c0_3] : memref<152x32xf32, #tpu.memory_space<vmem>>, vector<8x32xf32>
    %cst = arith.constant dense<0.000000e+00> : vector<16x32xf32>
    %10 = tpu.matmul %7, %8, %cst {dimension_numbers = #tpu.dot_dimension_numbers<[1], [0], [0], [1], [0, 0, 1, 1], [], []>} : vector<16x104xf32>, vector<104x32xf32>, vector<16x32xf32> -> vector<16x32xf32>
    %11 = tpu.concatenate %9, %9 in 0 : vector<8x32xf32>, vector<8x32xf32> -> vector<16x32xf32>
    %12 = arith.addf %10, %11 : vector<16x32xf32>
    %c0_i32 = arith.constant 0 : i32
    %13 = vector.broadcast %c0_i32 : i32 to vector<2x8xi32>
    %14 = arith.cmpi ne, %0, %13 : vector<2x8xi32>
    %cst_4 = arith.constant 0.000000e+00 : f32
    %cst_5 = arith.constant -1.000000e+20 : f32
    %15 = vector.broadcast %cst_4 : f32 to vector<2x8xf32>
    %16 = vector.broadcast %cst_5 : f32 to vector<2x8xf32>
    %17 = arith.select %14, %15, %16 : vector<2x8xi1>, vector<2x8xf32>
    %18 = tpu.concatenate %17, %17 in 0 : vector<2x8xf32>, vector<2x8xf32> -> vector<4x8xf32>
    %19 = vector.shape_cast %18 : vector<4x8xf32> to vector<4x1x8xf32>
    %20 = vector.shape_cast %19 : vector<4x1x8xf32> to vector<4x1x8xf32>
    %21 = vector.broadcast %20 : vector<4x1x8xf32> to vector<4x8x8xf32>
    %c0_6 = arith.constant 0 : index
    %c0_7 = arith.constant 0 : index
    %c0_8 = arith.constant 0 : index
    %22 = vector.load %arg3[%c0_6, %c0_7, %c0_8] : memref<2x224x128xf32, #tpu.memory_space<vmem>>, vector<1x32x96xf32>
    %23 = vector.shape_cast %22 : vector<1x32x96xf32> to vector<32x96xf32>
    %c0_9 = arith.constant 0 : index
    %c32 = arith.constant 32 : index
    %c0_10 = arith.constant 0 : index
    %24 = vector.load %arg3[%c0_9, %c32, %c0_10] : memref<2x224x128xf32, #tpu.memory_space<vmem>>, vector<1x32x32xf32>
    %25 = vector.shape_cast %24 : vector<1x32x32xf32> to vector<32x32xf32>
    %c0_11 = arith.constant 0 : index
    %c64 = arith.constant 64 : index
    %c0_12 = arith.constant 0 : index
    %26 = vector.load %arg3[%c0_11, %c64, %c0_12] : memref<2x224x128xf32, #tpu.memory_space<vmem>>, vector<1x32x128xf32>
    %27 = vector.shape_cast %26 : vector<1x32x128xf32> to vector<32x128xf32>
    %c0_13 = arith.constant 0 : index
    %c96 = arith.constant 96 : index
    %c0_14 = arith.constant 0 : index
    %28 = vector.load %arg3[%c0_13, %c96, %c0_14] : memref<2x224x128xf32, #tpu.memory_space<vmem>>, vector<1x128x32xf32>
    %29 = vector.shape_cast %28 : vector<1x128x32xf32> to vector<128x32xf32>
    %c0_15 = arith.constant 0 : index
    %c0_16 = arith.constant 0 : index
    %c0_17 = arith.constant 0 : index
    %30 = vector.load %arg4[%c0_15, %c0_16, %c0_17] : memref<2x8x128xf32, #tpu.memory_space<vmem>>, vector<1x1x32xf32>
    %31 = vector.shape_cast %30 : vector<1x1x32xf32> to vector<1x32xf32>
    %c0_18 = arith.constant 0 : index
    %c1 = arith.constant 1 : index
    %c0_19 = arith.constant 0 : index
    %32 = vector.load %arg4[%c0_18, %c1, %c0_19] : memref<2x8x128xf32, #tpu.memory_space<vmem>>, vector<1x1x32xf32>
    %33 = vector.shape_cast %32 : vector<1x1x32xf32> to vector<1x32xf32>
    %c0_20 = arith.constant 0 : index
    %c2 = arith.constant 2 : index
    %c0_21 = arith.constant 0 : index
    %34 = vector.load %arg4[%c0_20, %c2, %c0_21] : memref<2x8x128xf32, #tpu.memory_space<vmem>>, vector<1x1x32xf32>
    %35 = vector.shape_cast %34 : vector<1x1x32xf32> to vector<1x32xf32>
    %c0_22 = arith.constant 0 : index
    %c3 = arith.constant 3 : index
    %c0_23 = arith.constant 0 : index
    %36 = vector.load %arg4[%c0_22, %c3, %c0_23] : memref<2x8x128xf32, #tpu.memory_space<vmem>>, vector<1x1x128xf32>
    %37 = vector.shape_cast %36 : vector<1x1x128xf32> to vector<1x128xf32>
    %c0_24 = arith.constant 0 : index
    %c4 = arith.constant 4 : index
    %c0_25 = arith.constant 0 : index
    %38 = vector.load %arg4[%c0_24, %c4, %c0_25] : memref<2x8x128xf32, #tpu.memory_space<vmem>>, vector<1x1x32xf32>
    %39 = vector.shape_cast %38 : vector<1x1x32xf32> to vector<1x32xf32>
    %c0_26 = arith.constant 0 : index
    %c5 = arith.constant 5 : index
    %c0_27 = arith.constant 0 : index
    %40 = vector.load %arg4[%c0_26, %c5, %c0_27] : memref<2x8x128xf32, #tpu.memory_space<vmem>>, vector<1x1x32xf32>
    %41 = vector.shape_cast %40 : vector<1x1x32xf32> to vector<1x32xf32>
    %c0_28 = arith.constant 0 : index
    %c6 = arith.constant 6 : index
    %c0_29 = arith.constant 0 : index
    %42 = vector.load %arg4[%c0_28, %c6, %c0_29] : memref<2x8x128xf32, #tpu.memory_space<vmem>>, vector<1x1x32xf32>
    %43 = vector.shape_cast %42 : vector<1x1x32xf32> to vector<1x32xf32>
    %cst_30 = arith.constant dense<0.000000e+00> : vector<16x96xf32>
    %44 = tpu.matmul %12, %23, %cst_30 {dimension_numbers = #tpu.dot_dimension_numbers<[1], [0], [0], [1], [0, 0, 1, 1], [], []>} : vector<16x32xf32>, vector<32x96xf32>, vector<16x96xf32> -> vector<16x96xf32>
    %45 = vector.extract_strided_slice %44 {offsets = [0, 0], sizes = [16, 16], strides = [1, 1]} : vector<16x96xf32> to vector<16x16xf32>
    %46 = vector.extract_strided_slice %44 {offsets = [0, 16], sizes = [16, 16], strides = [1, 1]} : vector<16x96xf32> to vector<16x16xf32>
    %47 = tpu.concatenate %45, %46 in 0 : vector<16x16xf32>, vector<16x16xf32> -> vector<32x16xf32>
    %48 = vector.shape_cast %47 : vector<32x16xf32> to vector<4x8x16xf32>
    %49 = vector.extract_strided_slice %44 {offsets = [0, 32], sizes = [16, 16], strides = [1, 1]} : vector<16x96xf32> to vector<16x16xf32>
    %50 = vector.extract_strided_slice %44 {offsets = [0, 48], sizes = [16, 16], strides = [1, 1]} : vector<16x96xf32> to vector<16x16xf32>
    %51 = tpu.concatenate %49, %50 in 0 : vector<16x16xf32>, vector<16x16xf32> -> vector<32x16xf32>
    %52 = vector.shape_cast %51 : vector<32x16xf32> to vector<4x8x16xf32>
    %53 = vector.extract_strided_slice %44 {offsets = [0, 64], sizes = [16, 16], strides = [1, 1]} : vector<16x96xf32> to vector<16x16xf32>
    %54 = vector.extract_strided_slice %44 {offsets = [0, 80], sizes = [16, 16], strides = [1, 1]} : vector<16x96xf32> to vector<16x16xf32>
    %55 = tpu.concatenate %53, %54 in 0 : vector<16x16xf32>, vector<16x16xf32> -> vector<32x16xf32>
    %56 = vector.shape_cast %55 : vector<32x16xf32> to vector<4x8x16xf32>
    "tpu.trace_start"() <{level = 10 : i32, message = "zqd,zkd->zqk"}> : () -> ()
    %cst_31 = arith.constant dense<0.000000e+00> : vector<4x8x8xf32>
    %57 = tpu.matmul %48, %52, %cst_31 {dimension_numbers = #tpu.dot_dimension_numbers<[2], [2], [1], [1], [0, 0, 0, 1, 1, 1], [0], [0]>} : vector<4x8x16xf32>, vector<4x8x16xf32>, vector<4x8x8xf32> -> vector<4x8x8xf32>
    "tpu.trace_stop"() : () -> ()
    %cst_32 = arith.constant 0.176776692 : f32
    %58 = vector.broadcast %cst_32 : f32 to vector<4x8x8xf32>
    %59 = arith.mulf %57, %58 : vector<4x8x8xf32>
    %60 = arith.addf %59, %21 : vector<4x8x8xf32>
    %cst_33 = arith.constant dense<0xFF800000> : vector<4x8xf32>
    %61 = vector.multi_reduction <maximumf>, %60, %cst_33 [2] : vector<4x8x8xf32> to vector<4x8xf32>
    %62 = vector.shape_cast %61 : vector<4x8xf32> to vector<4x8x1xf32>
    %63 = vector.broadcast %62 : vector<4x8x1xf32> to vector<4x8x8xf32>
    %64 = arith.subf %60, %63 : vector<4x8x8xf32>
    %65 = math.exp %64 : vector<4x8x8xf32>
    %cst_34 = arith.constant dense<0.000000e+00> : vector<4x8xf32>
    %66 = vector.multi_reduction <add>, %65, %cst_34 [2] : vector<4x8x8xf32> to vector<4x8xf32>
    %67 = vector.shape_cast %66 : vector<4x8xf32> to vector<4x8x1xf32>
    %68 = tpu.reciprocal %67 {approx = true} : vector<4x8x1xf32> -> vector<4x8x1xf32>
    %69 = vector.broadcast %68 : vector<4x8x1xf32> to vector<4x8x8xf32>
    %70 = arith.mulf %65, %69 : vector<4x8x8xf32>
    "tpu.trace_start"() <{level = 10 : i32, message = "zqk,zkd->zqd"}> : () -> ()
    %cst_35 = arith.constant dense<0.000000e+00> : vector<4x8x16xf32>
    %71 = tpu.matmul %70, %56, %cst_35 {dimension_numbers = #tpu.dot_dimension_numbers<[2], [1], [1], [2], [0, 0, 0, 1, 1, 2], [0], [0]>} : vector<4x8x8xf32>, vector<4x8x16xf32>, vector<4x8x16xf32> -> vector<4x8x16xf32>
    "tpu.trace_stop"() : () -> ()
    %72 = vector.shape_cast %71 : vector<4x8x16xf32> to vector<32x16xf32>
    %73 = vector.extract_strided_slice %72 {offsets = [0, 0], sizes = [16, 16], strides = [1, 1]} : vector<32x16xf32> to vector<16x16xf32>
    %74 = vector.extract_strided_slice %72 {offsets = [16, 0], sizes = [16, 16], strides = [1, 1]} : vector<32x16xf32> to vector<16x16xf32>
    %75 = tpu.concatenate %73, %74 in 1 : vector<16x16xf32>, vector<16x16xf32> -> vector<16x32xf32>
    %cst_36 = arith.constant dense<0.000000e+00> : vector<16x32xf32>
    %76 = tpu.matmul %75, %25, %cst_36 {dimension_numbers = #tpu.dot_dimension_numbers<[1], [0], [0], [1], [0, 0, 1, 1], [], []>} : vector<16x32xf32>, vector<32x32xf32>, vector<16x32xf32> -> vector<16x32xf32>
    %77 = vector.broadcast %31 : vector<1x32xf32> to vector<16x32xf32>
    %78 = arith.addf %76, %77 : vector<16x32xf32>
    %79 = arith.addf %78, %12 : vector<16x32xf32>
    %cst_37 = arith.constant dense<0.000000e+00> : vector<16xf32>
    %80 = vector.multi_reduction <add>, %79, %cst_37 [1] : vector<16x32xf32> to vector<16xf32>
    %81 = vector.shape_cast %80 : vector<16xf32> to vector<16x1xf32>
    %cst_38 = arith.constant 3.200000e+01 : f32
    %82 = vector.broadcast %cst_38 : f32 to vector<16x1xf32>
    %83 = arith.divf %81, %82 : vector<16x1xf32>
    %84 = vector.broadcast %83 : vector<16x1xf32> to vector<16x32xf32>
    %85 = arith.subf %79, %84 : vector<16x32xf32>
    %86 = arith.mulf %85, %85 : vector<16x32xf32>
    %cst_39 = arith.constant dense<0.000000e+00> : vector<16xf32>
    %87 = vector.multi_reduction <add>, %86, %cst_39 [1] : vector<16x32xf32> to vector<16xf32>
    %88 = vector.shape_cast %87 : vector<16xf32> to vector<16x1xf32>
    %cst_40 = arith.constant 3.200000e+01 : f32
    %89 = vector.broadcast %cst_40 : f32 to vector<16x1xf32>
    %90 = arith.divf %88, %89 : vector<16x1xf32>
    %91 = vector.broadcast %83 : vector<16x1xf32> to vector<16x32xf32>
    %92 = arith.subf %79, %91 : vector<16x32xf32>
    %cst_41 = arith.constant 9.99999974E-6 : f32
    %93 = vector.broadcast %cst_41 : f32 to vector<16x1xf32>
    %94 = arith.addf %90, %93 : vector<16x1xf32>
    %95 = math.rsqrt %94 : vector<16x1xf32>
    %96 = vector.broadcast %95 : vector<16x1xf32> to vector<16x32xf32>
    %97 = arith.mulf %92, %96 : vector<16x32xf32>
    %98 = vector.broadcast %33 : vector<1x32xf32> to vector<16x32xf32>
    %99 = arith.mulf %97, %98 : vector<16x32xf32>
    %100 = vector.broadcast %35 : vector<1x32xf32> to vector<16x32xf32>
    %101 = arith.addf %99, %100 : vector<16x32xf32>
    %cst_42 = arith.constant dense<0.000000e+00> : vector<16x128xf32>
    %102 = tpu.matmul %101, %27, %cst_42 {dimension_numbers = #tpu.dot_dimension_numbers<[1], [0], [0], [1], [0, 0, 1, 1], [], []>} : vector<16x32xf32>, vector<32x128xf32>, vector<16x128xf32> -> vector<16x128xf32>
    %103 = vector.broadcast %37 : vector<1x128xf32> to vector<16x128xf32>
    %104 = arith.addf %102, %103 : vector<16x128xf32>
    %cst_43 = arith.constant 0.000000e+00 : f32
    %105 = vector.broadcast %cst_43 : f32 to vector<16x128xf32>
    %106 = arith.maximumf %104, %105 : vector<16x128xf32>
    %cst_44 = arith.constant dense<0.000000e+00> : vector<16x32xf32>
    %107 = tpu.matmul %106, %29, %cst_44 {dimension_numbers = #tpu.dot_dimension_numbers<[1], [0], [0], [1], [0, 0, 1, 1], [], []>} : vector<16x128xf32>, vector<128x32xf32>, vector<16x32xf32> -> vector<16x32xf32>
    %108 = vector.broadcast %39 : vector<1x32xf32> to vector<16x32xf32>
    %109 = arith.addf %107, %108 : vector<16x32xf32>
    %110 = arith.addf %109, %101 : vector<16x32xf32>
    %cst_45 = arith.constant dense<0.000000e+00> : vector<16xf32>
    %111 = vector.multi_reduction <add>, %110, %cst_45 [1] : vector<16x32xf32> to vector<16xf32>
    %112 = vector.shape_cast %111 : vector<16xf32> to vector<16x1xf32>
    %cst_46 = arith.constant 3.200000e+01 : f32
    %113 = vector.broadcast %cst_46 : f32 to vector<16x1xf32>
    %114 = arith.divf %112, %113 : vector<16x1xf32>
    %115 = vector.broadcast %114 : vector<16x1xf32> to vector<16x32xf32>
    %116 = arith.subf %110, %115 : vector<16x32xf32>
    %117 = arith.mulf %116, %116 : vector<16x32xf32>
    %cst_47 = arith.constant dense<0.000000e+00> : vector<16xf32>
    %118 = vector.multi_reduction <add>, %117, %cst_47 [1] : vector<16x32xf32> to vector<16xf32>
    %119 = vector.shape_cast %118 : vector<16xf32> to vector<16x1xf32>
    %cst_48 = arith.constant 3.200000e+01 : f32
    %120 = vector.broadcast %cst_48 : f32 to vector<16x1xf32>
    %121 = arith.divf %119, %120 : vector<16x1xf32>
    %122 = vector.broadcast %114 : vector<16x1xf32> to vector<16x32xf32>
    %123 = arith.subf %110, %122 : vector<16x32xf32>
    %cst_49 = arith.constant 9.99999974E-6 : f32
    %124 = vector.broadcast %cst_49 : f32 to vector<16x1xf32>
    %125 = arith.addf %121, %124 : vector<16x1xf32>
    %126 = math.rsqrt %125 : vector<16x1xf32>
    %127 = vector.broadcast %126 : vector<16x1xf32> to vector<16x32xf32>
    %128 = arith.mulf %123, %127 : vector<16x32xf32>
    %129 = vector.broadcast %41 : vector<1x32xf32> to vector<16x32xf32>
    %130 = arith.mulf %128, %129 : vector<16x32xf32>
    %131 = vector.broadcast %43 : vector<1x32xf32> to vector<16x32xf32>
    %132 = arith.addf %130, %131 : vector<16x32xf32>
    %c1_50 = arith.constant 1 : index
    %c0_51 = arith.constant 0 : index
    %c0_52 = arith.constant 0 : index
    %133 = vector.load %arg3[%c1_50, %c0_51, %c0_52] : memref<2x224x128xf32, #tpu.memory_space<vmem>>, vector<1x32x96xf32>
    %134 = vector.shape_cast %133 : vector<1x32x96xf32> to vector<32x96xf32>
    %c1_53 = arith.constant 1 : index
    %c32_54 = arith.constant 32 : index
    %c0_55 = arith.constant 0 : index
    %135 = vector.load %arg3[%c1_53, %c32_54, %c0_55] : memref<2x224x128xf32, #tpu.memory_space<vmem>>, vector<1x32x32xf32>
    %136 = vector.shape_cast %135 : vector<1x32x32xf32> to vector<32x32xf32>
    %c1_56 = arith.constant 1 : index
    %c64_57 = arith.constant 64 : index
    %c0_58 = arith.constant 0 : index
    %137 = vector.load %arg3[%c1_56, %c64_57, %c0_58] : memref<2x224x128xf32, #tpu.memory_space<vmem>>, vector<1x32x128xf32>
    %138 = vector.shape_cast %137 : vector<1x32x128xf32> to vector<32x128xf32>
    %c1_59 = arith.constant 1 : index
    %c96_60 = arith.constant 96 : index
    %c0_61 = arith.constant 0 : index
    %139 = vector.load %arg3[%c1_59, %c96_60, %c0_61] : memref<2x224x128xf32, #tpu.memory_space<vmem>>, vector<1x128x32xf32>
    %140 = vector.shape_cast %139 : vector<1x128x32xf32> to vector<128x32xf32>
    %c1_62 = arith.constant 1 : index
    %c0_63 = arith.constant 0 : index
    %c0_64 = arith.constant 0 : index
    %141 = vector.load %arg4[%c1_62, %c0_63, %c0_64] : memref<2x8x128xf32, #tpu.memory_space<vmem>>, vector<1x1x32xf32>
    %142 = vector.shape_cast %141 : vector<1x1x32xf32> to vector<1x32xf32>
    %c1_65 = arith.constant 1 : index
    %c1_66 = arith.constant 1 : index
    %c0_67 = arith.constant 0 : index
    %143 = vector.load %arg4[%c1_65, %c1_66, %c0_67] : memref<2x8x128xf32, #tpu.memory_space<vmem>>, vector<1x1x32xf32>
    %144 = vector.shape_cast %143 : vector<1x1x32xf32> to vector<1x32xf32>
    %c1_68 = arith.constant 1 : index
    %c2_69 = arith.constant 2 : index
    %c0_70 = arith.constant 0 : index
    %145 = vector.load %arg4[%c1_68, %c2_69, %c0_70] : memref<2x8x128xf32, #tpu.memory_space<vmem>>, vector<1x1x32xf32>
    %146 = vector.shape_cast %145 : vector<1x1x32xf32> to vector<1x32xf32>
    %c1_71 = arith.constant 1 : index
    %c3_72 = arith.constant 3 : index
    %c0_73 = arith.constant 0 : index
    %147 = vector.load %arg4[%c1_71, %c3_72, %c0_73] : memref<2x8x128xf32, #tpu.memory_space<vmem>>, vector<1x1x128xf32>
    %148 = vector.shape_cast %147 : vector<1x1x128xf32> to vector<1x128xf32>
    %c1_74 = arith.constant 1 : index
    %c4_75 = arith.constant 4 : index
    %c0_76 = arith.constant 0 : index
    %149 = vector.load %arg4[%c1_74, %c4_75, %c0_76] : memref<2x8x128xf32, #tpu.memory_space<vmem>>, vector<1x1x32xf32>
    %150 = vector.shape_cast %149 : vector<1x1x32xf32> to vector<1x32xf32>
    %c1_77 = arith.constant 1 : index
    %c5_78 = arith.constant 5 : index
    %c0_79 = arith.constant 0 : index
    %151 = vector.load %arg4[%c1_77, %c5_78, %c0_79] : memref<2x8x128xf32, #tpu.memory_space<vmem>>, vector<1x1x32xf32>
    %152 = vector.shape_cast %151 : vector<1x1x32xf32> to vector<1x32xf32>
    %c1_80 = arith.constant 1 : index
    %c6_81 = arith.constant 6 : index
    %c0_82 = arith.constant 0 : index
    %153 = vector.load %arg4[%c1_80, %c6_81, %c0_82] : memref<2x8x128xf32, #tpu.memory_space<vmem>>, vector<1x1x32xf32>
    %154 = vector.shape_cast %153 : vector<1x1x32xf32> to vector<1x32xf32>
    %cst_83 = arith.constant dense<0.000000e+00> : vector<16x96xf32>
    %155 = tpu.matmul %132, %134, %cst_83 {dimension_numbers = #tpu.dot_dimension_numbers<[1], [0], [0], [1], [0, 0, 1, 1], [], []>} : vector<16x32xf32>, vector<32x96xf32>, vector<16x96xf32> -> vector<16x96xf32>
    %156 = vector.extract_strided_slice %155 {offsets = [0, 0], sizes = [16, 16], strides = [1, 1]} : vector<16x96xf32> to vector<16x16xf32>
    %157 = vector.extract_strided_slice %155 {offsets = [0, 16], sizes = [16, 16], strides = [1, 1]} : vector<16x96xf32> to vector<16x16xf32>
    %158 = tpu.concatenate %156, %157 in 0 : vector<16x16xf32>, vector<16x16xf32> -> vector<32x16xf32>
    %159 = vector.shape_cast %158 : vector<32x16xf32> to vector<4x8x16xf32>
    %160 = vector.extract_strided_slice %155 {offsets = [0, 32], sizes = [16, 16], strides = [1, 1]} : vector<16x96xf32> to vector<16x16xf32>
    %161 = vector.extract_strided_slice %155 {offsets = [0, 48], sizes = [16, 16], strides = [1, 1]} : vector<16x96xf32> to vector<16x16xf32>
    %162 = tpu.concatenate %160, %161 in 0 : vector<16x16xf32>, vector<16x16xf32> -> vector<32x16xf32>
    %163 = vector.shape_cast %162 : vector<32x16xf32> to vector<4x8x16xf32>
    %164 = vector.extract_strided_slice %155 {offsets = [0, 64], sizes = [16, 16], strides = [1, 1]} : vector<16x96xf32> to vector<16x16xf32>
    %165 = vector.extract_strided_slice %155 {offsets = [0, 80], sizes = [16, 16], strides = [1, 1]} : vector<16x96xf32> to vector<16x16xf32>
    %166 = tpu.concatenate %164, %165 in 0 : vector<16x16xf32>, vector<16x16xf32> -> vector<32x16xf32>
    %167 = vector.shape_cast %166 : vector<32x16xf32> to vector<4x8x16xf32>
    "tpu.trace_start"() <{level = 10 : i32, message = "zqd,zkd->zqk"}> : () -> ()
    %cst_84 = arith.constant dense<0.000000e+00> : vector<4x8x8xf32>
    %168 = tpu.matmul %159, %163, %cst_84 {dimension_numbers = #tpu.dot_dimension_numbers<[2], [2], [1], [1], [0, 0, 0, 1, 1, 1], [0], [0]>} : vector<4x8x16xf32>, vector<4x8x16xf32>, vector<4x8x8xf32> -> vector<4x8x8xf32>
    "tpu.trace_stop"() : () -> ()
    %cst_85 = arith.constant 0.176776692 : f32
    %169 = vector.broadcast %cst_85 : f32 to vector<4x8x8xf32>
    %170 = arith.mulf %168, %169 : vector<4x8x8xf32>
    %171 = arith.addf %170, %21 : vector<4x8x8xf32>
    %cst_86 = arith.constant dense<0xFF800000> : vector<4x8xf32>
    %172 = vector.multi_reduction <maximumf>, %171, %cst_86 [2] : vector<4x8x8xf32> to vector<4x8xf32>
    %173 = vector.shape_cast %172 : vector<4x8xf32> to vector<4x8x1xf32>
    %174 = vector.broadcast %173 : vector<4x8x1xf32> to vector<4x8x8xf32>
    %175 = arith.subf %171, %174 : vector<4x8x8xf32>
    %176 = math.exp %175 : vector<4x8x8xf32>
    %cst_87 = arith.constant dense<0.000000e+00> : vector<4x8xf32>
    %177 = vector.multi_reduction <add>, %176, %cst_87 [2] : vector<4x8x8xf32> to vector<4x8xf32>
    %178 = vector.shape_cast %177 : vector<4x8xf32> to vector<4x8x1xf32>
    %179 = tpu.reciprocal %178 {approx = true} : vector<4x8x1xf32> -> vector<4x8x1xf32>
    %180 = vector.broadcast %179 : vector<4x8x1xf32> to vector<4x8x8xf32>
    %181 = arith.mulf %176, %180 : vector<4x8x8xf32>
    "tpu.trace_start"() <{level = 10 : i32, message = "zqk,zkd->zqd"}> : () -> ()
    %cst_88 = arith.constant dense<0.000000e+00> : vector<4x8x16xf32>
    %182 = tpu.matmul %181, %167, %cst_88 {dimension_numbers = #tpu.dot_dimension_numbers<[2], [1], [1], [2], [0, 0, 0, 1, 1, 2], [0], [0]>} : vector<4x8x8xf32>, vector<4x8x16xf32>, vector<4x8x16xf32> -> vector<4x8x16xf32>
    "tpu.trace_stop"() : () -> ()
    %183 = vector.shape_cast %182 : vector<4x8x16xf32> to vector<32x16xf32>
    %184 = vector.extract_strided_slice %183 {offsets = [0, 0], sizes = [16, 16], strides = [1, 1]} : vector<32x16xf32> to vector<16x16xf32>
    %185 = vector.extract_strided_slice %183 {offsets = [16, 0], sizes = [16, 16], strides = [1, 1]} : vector<32x16xf32> to vector<16x16xf32>
    %186 = tpu.concatenate %184, %185 in 1 : vector<16x16xf32>, vector<16x16xf32> -> vector<16x32xf32>
    %cst_89 = arith.constant dense<0.000000e+00> : vector<16x32xf32>
    %187 = tpu.matmul %186, %136, %cst_89 {dimension_numbers = #tpu.dot_dimension_numbers<[1], [0], [0], [1], [0, 0, 1, 1], [], []>} : vector<16x32xf32>, vector<32x32xf32>, vector<16x32xf32> -> vector<16x32xf32>
    %188 = vector.broadcast %142 : vector<1x32xf32> to vector<16x32xf32>
    %189 = arith.addf %187, %188 : vector<16x32xf32>
    %190 = arith.addf %189, %132 : vector<16x32xf32>
    %cst_90 = arith.constant dense<0.000000e+00> : vector<16xf32>
    %191 = vector.multi_reduction <add>, %190, %cst_90 [1] : vector<16x32xf32> to vector<16xf32>
    %192 = vector.shape_cast %191 : vector<16xf32> to vector<16x1xf32>
    %cst_91 = arith.constant 3.200000e+01 : f32
    %193 = vector.broadcast %cst_91 : f32 to vector<16x1xf32>
    %194 = arith.divf %192, %193 : vector<16x1xf32>
    %195 = vector.broadcast %194 : vector<16x1xf32> to vector<16x32xf32>
    %196 = arith.subf %190, %195 : vector<16x32xf32>
    %197 = arith.mulf %196, %196 : vector<16x32xf32>
    %cst_92 = arith.constant dense<0.000000e+00> : vector<16xf32>
    %198 = vector.multi_reduction <add>, %197, %cst_92 [1] : vector<16x32xf32> to vector<16xf32>
    %199 = vector.shape_cast %198 : vector<16xf32> to vector<16x1xf32>
    %cst_93 = arith.constant 3.200000e+01 : f32
    %200 = vector.broadcast %cst_93 : f32 to vector<16x1xf32>
    %201 = arith.divf %199, %200 : vector<16x1xf32>
    %202 = vector.broadcast %194 : vector<16x1xf32> to vector<16x32xf32>
    %203 = arith.subf %190, %202 : vector<16x32xf32>
    %cst_94 = arith.constant 9.99999974E-6 : f32
    %204 = vector.broadcast %cst_94 : f32 to vector<16x1xf32>
    %205 = arith.addf %201, %204 : vector<16x1xf32>
    %206 = math.rsqrt %205 : vector<16x1xf32>
    %207 = vector.broadcast %206 : vector<16x1xf32> to vector<16x32xf32>
    %208 = arith.mulf %203, %207 : vector<16x32xf32>
    %209 = vector.broadcast %144 : vector<1x32xf32> to vector<16x32xf32>
    %210 = arith.mulf %208, %209 : vector<16x32xf32>
    %211 = vector.broadcast %146 : vector<1x32xf32> to vector<16x32xf32>
    %212 = arith.addf %210, %211 : vector<16x32xf32>
    %cst_95 = arith.constant dense<0.000000e+00> : vector<16x128xf32>
    %213 = tpu.matmul %212, %138, %cst_95 {dimension_numbers = #tpu.dot_dimension_numbers<[1], [0], [0], [1], [0, 0, 1, 1], [], []>} : vector<16x32xf32>, vector<32x128xf32>, vector<16x128xf32> -> vector<16x128xf32>
    %214 = vector.broadcast %148 : vector<1x128xf32> to vector<16x128xf32>
    %215 = arith.addf %213, %214 : vector<16x128xf32>
    %cst_96 = arith.constant 0.000000e+00 : f32
    %216 = vector.broadcast %cst_96 : f32 to vector<16x128xf32>
    %217 = arith.maximumf %215, %216 : vector<16x128xf32>
    %cst_97 = arith.constant dense<0.000000e+00> : vector<16x32xf32>
    %218 = tpu.matmul %217, %140, %cst_97 {dimension_numbers = #tpu.dot_dimension_numbers<[1], [0], [0], [1], [0, 0, 1, 1], [], []>} : vector<16x128xf32>, vector<128x32xf32>, vector<16x32xf32> -> vector<16x32xf32>
    %219 = vector.broadcast %150 : vector<1x32xf32> to vector<16x32xf32>
    %220 = arith.addf %218, %219 : vector<16x32xf32>
    %221 = arith.addf %220, %212 : vector<16x32xf32>
    %cst_98 = arith.constant dense<0.000000e+00> : vector<16xf32>
    %222 = vector.multi_reduction <add>, %221, %cst_98 [1] : vector<16x32xf32> to vector<16xf32>
    %223 = vector.shape_cast %222 : vector<16xf32> to vector<16x1xf32>
    %cst_99 = arith.constant 3.200000e+01 : f32
    %224 = vector.broadcast %cst_99 : f32 to vector<16x1xf32>
    %225 = arith.divf %223, %224 : vector<16x1xf32>
    %226 = vector.broadcast %225 : vector<16x1xf32> to vector<16x32xf32>
    %227 = arith.subf %221, %226 : vector<16x32xf32>
    %228 = arith.mulf %227, %227 : vector<16x32xf32>
    %cst_100 = arith.constant dense<0.000000e+00> : vector<16xf32>
    %229 = vector.multi_reduction <add>, %228, %cst_100 [1] : vector<16x32xf32> to vector<16xf32>
    %230 = vector.shape_cast %229 : vector<16xf32> to vector<16x1xf32>
    %cst_101 = arith.constant 3.200000e+01 : f32
    %231 = vector.broadcast %cst_101 : f32 to vector<16x1xf32>
    %232 = arith.divf %230, %231 : vector<16x1xf32>
    %233 = vector.broadcast %225 : vector<16x1xf32> to vector<16x32xf32>
    %234 = arith.subf %221, %233 : vector<16x32xf32>
    %cst_102 = arith.constant 9.99999974E-6 : f32
    %235 = vector.broadcast %cst_102 : f32 to vector<16x1xf32>
    %236 = arith.addf %232, %235 : vector<16x1xf32>
    %237 = math.rsqrt %236 : vector<16x1xf32>
    %238 = vector.broadcast %237 : vector<16x1xf32> to vector<16x32xf32>
    %239 = arith.mulf %234, %238 : vector<16x32xf32>
    %240 = vector.broadcast %152 : vector<1x32xf32> to vector<16x32xf32>
    %241 = arith.mulf %239, %240 : vector<16x32xf32>
    %242 = vector.broadcast %154 : vector<1x32xf32> to vector<16x32xf32>
    %243 = arith.addf %241, %242 : vector<16x32xf32>
    %244 = vector.shape_cast %243 : vector<16x32xf32> to vector<2x8x32xf32>
    %245 = vector.extract_strided_slice %244 {offsets = [0, 0, 0], sizes = [2, 1, 32], strides = [1, 1, 1]} : vector<2x8x32xf32> to vector<2x1x32xf32>
    %246 = vector.shape_cast %245 : vector<2x1x32xf32> to vector<2x32xf32>
    %c120 = arith.constant 120 : index
    %c0_103 = arith.constant 0 : index
    %247 = vector.load %arg2[%c120, %c0_103] : memref<152x32xf32, #tpu.memory_space<vmem>>, vector<32x2xf32>
    %cst_104 = arith.constant dense<0.000000e+00> : vector<2x2xf32>
    %248 = tpu.matmul %246, %247, %cst_104 {dimension_numbers = #tpu.dot_dimension_numbers<[1], [0], [0], [1], [0, 0, 1, 1], [], []>} : vector<2x32xf32>, vector<32x2xf32>, vector<2x2xf32> -> vector<2x2xf32>
    %cst_105 = arith.constant dense<0xFF800000> : vector<2xf32>
    %249 = vector.multi_reduction <maximumf>, %248, %cst_105 [1] : vector<2x2xf32> to vector<2xf32>
    %250 = vector.shape_cast %249 : vector<2xf32> to vector<2x1xf32>
    %251 = vector.broadcast %250 : vector<2x1xf32> to vector<2x2xf32>
    %252 = arith.subf %248, %251 : vector<2x2xf32>
    %253 = math.exp %252 : vector<2x2xf32>
    %cst_106 = arith.constant dense<0.000000e+00> : vector<2xf32>
    %254 = vector.multi_reduction <add>, %253, %cst_106 [1] : vector<2x2xf32> to vector<2xf32>
    %255 = vector.shape_cast %254 : vector<2xf32> to vector<2x1xf32>
    %256 = vector.broadcast %255 : vector<2x1xf32> to vector<2x2xf32>
    %257 = arith.divf %253, %256 : vector<2x2xf32>
    %c0_107 = arith.constant 0 : index
    %c0_108 = arith.constant 0 : index
    %258 = vector.load %arg5[%c0_107, %c0_108] : memref<2x2xf32, #tpu.memory_space<vmem>>, vector<2x2xf32>
    tpu.vector_store %arg5[%c0_107, %c0_108], %257 {strides = array<i32>} : memref<2x2xf32, #tpu.memory_space<vmem>>, vector<2x2xf32>,
    %cst_109 = arith.constant dense<0xFF800000> : vector<2xf32>
    %259 = vector.multi_reduction <maximumf>, %257, %cst_109 [1] : vector<2x2xf32> to vector<2xf32>
    %260 = vector.shape_cast %259 : vector<2xf32> to vector<2x1xf32>
    %261 = vector.broadcast %260 : vector<2x1xf32> to vector<2x2xf32>
    %262 = arith.subf %257, %261 : vector<2x2xf32>
    %263 = math.exp %262 : vector<2x2xf32>
    %cst_110 = arith.constant dense<0.000000e+00> : vector<2xf32>
    %264 = vector.multi_reduction <add>, %263, %cst_110 [1] : vector<2x2xf32> to vector<2xf32>
    %265 = vector.shape_cast %264 : vector<2xf32> to vector<2x1xf32>
    %266 = math.log %265 : vector<2x1xf32>
    %267 = arith.addf %260, %266 : vector<2x1xf32>
    %268 = vector.broadcast %267 : vector<2x1xf32> to vector<2x2xf32>
    %269 = arith.subf %257, %268 : vector<2x2xf32>
    %c0_111 = arith.constant 0 : index
    %c0_112 = arith.constant 0 : index
    %270 = vector.load %arg1[%c0_111, %c0_112] : memref<2x1xi32, #tpu.memory_space<vmem>>, vector<2x1xi32>
    %271 = tpu.iota {dimensions = array<i32: 1>} : vector<2x2xi32>
    %272 = vector.broadcast %270 : vector<2x1xi32> to vector<2x2xi32>
    %273 = arith.cmpi eq, %272, %271 : vector<2x2xi32>
    %274 = arith.extui %273 : vector<2x2xi1> to vector<2x2xi32>
    %275 = arith.sitofp %274 : vector<2x2xi32> to vector<2x2xf32>
    %276 = arith.mulf %275, %269 : vector<2x2xf32>
    %cst_113 = arith.constant dense<0.000000e+00> : vector<2xf32>
    %277 = vector.multi_reduction <add>, %276, %cst_113 [1] : vector<2x2xf32> to vector<2xf32>
    %278 = vector.shape_cast %277 : vector<2xf32> to vector<2x1xf32>
    %cst_114 = arith.constant dense<0.000000e+00> : vector<1xf32>
    %279 = vector.multi_reduction <add>, %278, %cst_114 [0] : vector<2x1xf32> to vector<1xf32>
    %280 = vector.shape_cast %279 : vector<1xf32> to vector<1x1xf32>
    %cst_115 = arith.constant 0.000000e+00 : f32
    %281 = vector.broadcast %cst_115 : f32 to vector<1x1xf32>
    %282 = arith.subf %281, %280 : vector<1x1xf32>
    %cst_116 = arith.constant 5.000000e-01 : f32
    %283 = vector.broadcast %cst_116 : f32 to vector<1x1xf32>
    %284 = arith.mulf %282, %283 : vector<1x1xf32>
    %c0_117 = arith.constant 0 : index
    %c0_118 = arith.constant 0 : index
    %285 = vector.load %arg6[%c0_117, %c0_118] : memref<1x1xf32, #tpu.memory_space<vmem>>, vector<1x1xf32>
    tpu.vector_store %arg6[%c0_117, %c0_118], %284 {strides = array<i32>} : memref<1x1xf32, #tpu.memory_space<vmem>>, vector<1x1xf32>,
    return
  }
}

</mosaic_0001>

<bundles_post_ra>
// kernel: imdb_forward_train.1
= control target key start
LH: loop header
LB: loop body
LE: loop exit
PB: predicated region body
PF: predicated region fallthrough
CT: control target
= control target key end

     0   :  { %12 = vsyncpa [#allocation3], 0  ;;  %s3628_s0 = inlined_call_operand.vmem [shape: s32[2,8], index: 0, kind: input, shape index: {}]   ;;  %s3629_s1 = inlined_call_operand.vmem [shape: s32[2,1], index: 1, kind: input, shape index: {}]   ;;  %s3630_s2 = inlined_call_operand.vmem [shape: f32[152,32], index: 2, kind: input, shape index: {}]   ;;  %s3631_s3 = inlined_call_operand.hbm [shape: f32[2,224,128], index: 3, kind: input, shape index: {}]   ;;  %s3632_s4 = inlined_call_operand.vmem [shape: f32[2,8,128], index: 4, kind: input, shape index: {}]   ;;  %s3633_s5 = inlined_call_operand.hbm [shape: f32[2,2], index: 5, kind: output, shape index: {0}]   ;;  %s3634_s6 = inlined_call_operand.hbm [shape: f32[1,1], index: 6, kind: output, shape index: {1}]  }
   0x1   :  { %13 = vsyncpa [#allocation4], 0 }
   0x2   :  { %14 = vsyncpa [#allocation7], 0  ;;  %s3200_s21 = smov [#allocation2]  }
   0x3   :  { %s26_s22 = sshll.u32 %s3200_s21, 4  ;;  %s27_s22 = int_to_ptr.vmem [resolvable:$true] %s26_s22 }
   0x4   :  { %s3142_s23 = scalar_lea.vmem %s27_s22, 7168  ;;  %p3147_p1 = scmp.lt.s32.totalorder %s27_s22, %s27_s22 }
   0x5   :  { %p3143_p0 = scmp.ne.s32.totalorder %s27_s22, %s3142_s23  ;;  %p3148_p2 = scmp.lt.s32.totalorder %s3142_s23, %s3142_s23 }
   0x7   :  { %p3149_p3 = por %p3148_p2, %p3147_p1 }
   0x9   :  { %p3150_p4 = pnand %p3149_p3, %p3143_p0 }
   0xb   :  { %3153 = shalt.err (!%p3150_p4)
}
   0xc   :  { %s3201_s24 = smov 128   ;;  %s3202_s25 = smov 8  }
   0xd   :  { %32 = dma.hbm_to_vmem [thread:$0]  %s3631_s3, 7168, %s27_s22, [#allocation3], %s3201_s24, %s3201_s24, %s3202_s25  }
   0xe   :  { %3194 = dma.done.wait [#allocation3], 7168  }
   0xf   :  { %3195 = vsyncadd [#allocation3], 4294960128  ;;  %v39_v0 = vlaneseq  ;;  %v3203_v1 = vmov 0.0   ;;  %v3204_v3 = vmov 1966171168   ;;  %v73_v9 = vld [vmem:[%s3630_s2 + $0x60] sm:$0xff] }
  0x10   :  { %2851 = vmatprep.subr.mxu1 %v3203_v1  ;;  %v166_v4 = vunpack.c.l.s4 %v3204_v3  ;;  %v38_v8 = vld [vmem:[%s3628_s0] sm:$0x3]  ;;  %v72_v10 = vld [vmem:[%s3630_s2 + $0x58] sm:$0xff]  ;;  %2806 = vmatprep.subr.mxu0 %v73_v9  ;;  %v3205_v12 = vmov -1e+20   ;;  %vm162_vm1 = vcmask 1041408  }
  0x11   :  { %v42_v2 = vshrl.u32 %v39_v0, 7  ;;  %vm157_vm0 = vcmp.ne.s32.totalorder %v38_v8, 0  ;;  %2807 = vmatpush3.msra.mxu0 %v73_v9  ;;  %v71_v15 = vld [vmem:[%s3630_s2 + $0x50] sm:$0xff]  ;;  %v70_v18 = vld [vmem:[%s3630_s2 + $0x48] sm:$0xff]  ;;  %v69_v21 = vld [vmem:[%s3630_s2 + $0x40] sm:$0xff]  ;;  %v3304_v31 = vand.u32 127, %v39_v0 }
  0x12   :  { %v167_v6 = vunpack.c.0.s8 %v166_v4  ;;  %v158_v13 = vsel %vm157_vm0, 0.0, %v3205_v12  ;;  %2808 = vmatprep.subr.mxu0 %v72_v10  ;;  %v68_v22 = vld [vmem:[%s3630_s2 + $0x38] sm:$0xff]  ;;  %v67_v23 = vld [vmem:[%s3630_s2 + $0x30] sm:$0xff]  ;;  %v66_v24 = vld [vmem:[%s3630_s2 + $0x28] sm:$0xff]  ;;  %vm75_vm2 = vcmask 850944   ;;  %vm244_vm5 = vcmask 261120  }
  0x13   :  { %v3253_v5 = vsub.s32 0, %v42_v2  ;;  %v50_v7 = vsub.s32 1, %v42_v2  ;;  %v160_v16 = vrot.slane %v158_v13, 6  ;;  %2809 = vmatpush3.msra.mxu0 %v72_v10  ;;  %v65_v25 = vld [vmem:[%s3630_s2 + $0x20] sm:$0xff]  ;;  %v64_v26 = vld [vmem:[%s3630_s2 + $0x18] sm:$0xff]  ;;  %v63_v27 = vld [vmem:[%s3630_s2 + $0x10] sm:$0xff] }
  0x14   :  { %v3265_v14 = vsub.s32 %v167_v6, %v42_v2  ;;  %2810 = vmatprep.subr.mxu0 %v71_v15  ;;  %v62_v28 = vld [vmem:[%s3630_s2 + $0x8] sm:$0xff]  ;;  %v61_v29 = vld [vmem:[%s3630_s2] sm:$0xff]  ;;  %v212_v30 = vld [vmem:[#allocation2 + $0x18] sm:$0xff]  ;;  %vm3206_vm6 = vmmov 0   ;;  %s3207_s3 = smov 96   ;;  %s3208_s8 = smov 112  }
  0x15   :  { %v44_v11 = vrot.slane %v38_v8, %v3253_v5  ;;  %v51_v17 = vrot.slane %v38_v8, %v50_v7  ;;  %v163_v19 = vsel %vm162_vm1, %v158_v13, %v160_v16  ;;  %2811 = vmatpush3.msra.mxu0 %v71_v15  ;;  %v211_v36 = vld [vmem:[#allocation2 + $0x10] sm:$0xff]  ;;  %v210_v37 = vld [vmem:[#allocation2 + $0x8] sm:$0xff]  ;;  %v209_v38 = vld [vmem:[#allocation2] sm:$0xff]  ;;  %2853 = vmatprep.mubr.msk.f32.mxu1 %vm3206_vm6, %v3203_v1  ;;  %vm334_vm7 = vcmask 130048   ;;  %s3209_s9 = smov 64   ;;  %s3210_s0 = smov 16  }
  0x16   :  { %v3275_v20 = vrot.slane %v163_v19, %v3265_v14  ;;  %2812 = vmatprep.subr.mxu0 %v70_v18  ;;  %v74_v40 = vld [vmem:[%s3630_s2 + $0x68] sm:$0xff]  ;;  %vm645_vm8 = vcmask 64512   ;;  %vm2468_vm9 = vcmask 1041409   ;;  %vm2542_vm10 = vcmask 9216  }
  0x17   :  { %46 = vbcast.lane.b32.xlu0 %v44_v11, 256  ;;  %2813 = vmatpush3.msra.mxu0 %v70_v18 }
  0x18   :  { %2814 = vmatprep.subr.mxu0 %v69_v21  ;;  %v172_v50 = vcombine.high %v3275_v20, %v3275_v20  ;;  %v179_v52 = vrot.slane %v3275_v20, %v3265_v14 }
  0x19   :  { %2815 = vmatpush3.msra.mxu0 %v69_v21 }
  0x1a   :  { %2816 = vmatprep.subr.mxu0 %v68_v22  ;;  %v186_v51 = vrot.slane %v172_v50, %v3265_v14  ;;  %v3376_v61 = vrot.slane %v179_v52, %v3253_v5  ;;  %v187_v4 = vcombine.high %v179_v52, %v179_v52 }
  0x1b   :  { %53 = vbcast.lane.b32.xlu0 %v51_v17, 256  ;;  %2817 = vmatpush3.msra.mxu0 %v68_v22 }
  0x1c   :  { %2818 = vmatprep.subr.mxu0 %v67_v23  ;;  %v3371_v55 = vrot.slane %v186_v51, %v3253_v5  ;;  %v3382_v6 = vrot.slane %v187_v4, %v3253_v5  ;;  %v188_v7 = vcombine.high %v186_v51, %v186_v51 }
  0x1d   :  { %2819 = vmatpush3.msra.mxu0 %v67_v23 }
  0x1e   :  { %2820 = vmatprep.subr.mxu0 %v66_v24  ;;  %v3386_v12 = vrot.slane %v188_v7, %v3253_v5 }
  0x1f   :  { %2821 = vmatpush3.msra.mxu0 %v66_v24 }
  0x20   :  { %2822 = vmatprep.subr.mxu0 %v65_v25 }
  0x21   :  { %2823 = vmatpush3.msra.mxu0 %v65_v25 }
  0x22   :  { %2824 = vmatprep.subr.mxu0 %v64_v26 }
  0x23   :  { %2825 = vmatpush3.msra.mxu0 %v64_v26 }
  0x24   :  { %2826 = vmatprep.subr.mxu0 %v63_v27 }
  0x25   :  { %2827 = vmatpush3.msra.mxu0 %v63_v27 }
  0x26   :  { %2828 = vmatprep.subr.mxu0 %v62_v28 }
  0x27   :  { %2829 = vmatpush3.msra.mxu0 %v62_v28 }
  0x28   :  { %2830 = vmatprep.subr.mxu0 %v61_v29 }
  0x29   :  { %2831 = vmatpush3.msra.mxu0 %v61_v29 }
  0x2a   :  { %2835 = vmatprep.subr.mxu0 %v212_v30 }
  0x89   :  { %v47_v32 = vpop.permute.xlu0 %46 }
  0x8a   :  { %vm55_vm3 = vcmp.eq.s32.totalorder %v47_v32, %v3304_v31 }
  0x8b   :  { %v2619_v33 = vsel %vm55_vm3, 1.0, %v3203_v1 }
  0x8c   :  { %2832 = vmatprep.mubr.msk.f32.mxu0 %vm75_vm2, %v2619_v33 }
  0x8d   :  { %v54_v34 = vpop.permute.xlu0 %53 }
  0x8e   :  { %vm56_vm4 = vcmp.eq.s32.totalorder %v54_v34, %v3304_v31 }
  0x8f   :  { %v2620_v35 = vsel %vm56_vm4, 1.0, %v3203_v1 }
  0x90   :  { %2833 = vmatmul.mubr.msk.f32.vlgmr.msra.gmra.mxu0 %vm75_vm2, %v2620_v35 }
  0x91   :  { %2836 = vmatpush3.msra.mxu0 %v212_v30 }
  0x92   :  { %2837 = vmatprep.subr.mxu0 %v211_v36 }
  0x93   :  { %2838 = vmatpush3.msra.mxu0 %v211_v36 }
  0x94   :  { %2839 = vmatprep.subr.mxu0 %v210_v37 }
  0x95   :  { %2840 = vmatpush3.msra.mxu0 %v210_v37 }
  0x96   :  { %2841 = vmatprep.subr.mxu0 %v209_v38 }
  0x97   :  { %2842 = vmatpush3.msra.mxu0 %v209_v38 }
  0x98   :  { %2846 = vmatprep.subr.mxu0 %v3203_v1 }
 0x150   :  { %v2834_v39 = vpop.f32.mrf.mxu0 }
 0x151   :  { %v3316_v43 = vadd.f32 %v2834_v39, %v74_v40 }
 0x152   :  { %v148_v41 = vpop.f32.mrf.mxu0 }
 0x153   :  { %v3314_v42 = vadd.f32 %v148_v41, %v74_v40 }
 0x155   :  { %2843 = vmatprep.mubr.msk.f32.mxu0 %vm244_vm5, %v3314_v42 }
 0x156   :  { %2844 = vmatmul.mubr.msk.f32.vlgmr.msra.gmra.mxu0 %vm244_vm5, %v3316_v43 }
 0x157   :  { %2848 = vmatprep.mubr.msk.f32.mxu0 %vm3206_vm6, %v3203_v1 }
 0x216   :  { %v3326_v44 = vpop.f32.mrf.mxu0 }
 0x217   :  { %409 = vrot.lane.b32.xlu0 %v3326_v44, %s3207_s3 }
 0x218   :  { %v317_v45 = vpop.f32.mrf.mxu0 }
 0x219   :  { %328 = vrot.lane.b32.xlu1 %v317_v45, %s3208_s8 }
 0x21d   :  { %330 = vrot.lane.b32.xlu1 %v3326_v44, %s3208_s8 }
 0x221   :  { %332 = vrot.lane.b32.xlu1 %v317_v45, %s3207_s3 }
 0x289   :  { %v410_v46 = vpop.permute.xlu0 %409 }
 0x28a   :  { %2852 = vmatpush3.xpose.msk.msra.mxu1 %vm334_vm7, %v410_v46 }
 0x28b   :  { %v3335_v47 = vpop.permute.xlu1 %328  ;;  %2856 = vmatprep.subr.mxu1 %v3203_v1 }
 0x28c   :  { %485 = vrot.lane.b32.xlu0 %v3335_v47, %s3207_s3 }
 0x28d   :  { %2854 = vmatmul.mubr.msk.f32.vlgmr.msra.gmra.mxu1 %vm334_vm7, %v3326_v44 }
 0x28e   :  { %2858 = vmatprep.mubr.msk.f32.mxu1 %vm3206_vm6, %v3203_v1 }
 0x28f   :  { %v3344_v48 = vpop.permute.xlu1 %330 }
 0x290   :  { %561 = vrot.lane.b32.xlu1 %v3344_v48, %s3207_s3 }
 0x293   :  { %v333_v49 = vpop.permute.xlu1 %332 }
 0x294   :  { %2847 = vmatpush3.xpose.msk.msra.mxu0 %vm334_vm7, %v333_v49 }
 0x295   :  { %2871 = vmatprep.subr.mxu0 %v3203_v1 }
 0x297   :  { %2849 = vmatmul.mubr.msk.f32.vlgmr.msra.gmra.mxu0 %vm334_vm7, %v317_v45 }
 0x298   :  { %2873 = vmatprep.mubr.msk.f32.mxu0 %vm3206_vm6, %v3203_v1 }
 0x2fe   :  { %v486_v53 = vpop.permute.xlu0 %485 }
 0x2ff   :  { %2857 = vmatpush3.xpose.msk.msra.mxu1 %vm334_vm7, %v486_v53 }
 0x300   :  { %2861 = vmatprep.subr.mxu1 %v3203_v1 }
 0x302   :  { %2859 = vmatmul.mubr.msk.f32.vlgmr.msra.gmra.mxu1 %vm334_vm7, %v3335_v47  ;;  %v562_v54 = vpop.permute.xlu1 %561 }
 0x303   :  { %2862 = vmatpush3.xpose.msk.msra.mxu1 %vm334_vm7, %v562_v54  ;;  %2863 = vmatprep.mubr.msk.f32.mxu1 %vm3206_vm6, %v3203_v1 }
 0x304   :  { %2866 = vmatprep.subr.mxu1 %v3203_v1 }
 0x306   :  { %2864 = vmatmul.mubr.msk.f32.vlgmr.msra.gmra.mxu1 %vm334_vm7, %v3344_v48 }
 0x307   :  { %2868 = vmatprep.mubr.msk.f32.mxu1 %vm3206_vm6, %v3203_v1 }
 0x34d   :  { %v481_v56 = vpop.f32.mrf.mxu1 }
 0x34e   :  { %v638_v57 = vmul.f32 0.17677669, %v481_v56 }
 0x34f   :  { %v2855_v58 = vpop.f32.mrf.mxu1 }
 0x350   :  { %v642_v59 = vadd.f32 %v638_v57, %v3371_v55  ;;  %v216_v58 = vld [vmem:[#allocation2 + $0x38] sm:$0xff] }
 0x352   :  { %v649_v60 = vsel %vm645_vm8, %v642_v59, -inf }
 0x353   :  { %650 = vmax.xlane.f32.xlu1 %v649_v60 }
 0x357   :  { %v405_v62 = vpop.f32.mrf.mxu0 }
 0x358   :  { %v637_v63 = vmul.f32 0.17677669, %v405_v62 }
 0x359   :  { %v2850_v0 = vpop.f32.mrf.mxu0 }
 0x35a   :  { %v641_v2 = vadd.f32 %v637_v63, %v3376_v61  ;;  %v214_v63 = vld [vmem:[#allocation2 + $0x28] sm:$0xff]  ;;  %v213_v0 = vld [vmem:[#allocation2 + $0x20] sm:$0xff] }
 0x35c   :  { %v646_v3 = vsel %vm645_vm8, %v641_v2, -inf }
 0x35d   :  { %647 = vmax.xlane.f32.xlu0 %v646_v3 }
 0x364   :  { %690 = vrot.lane.b32.xlu1 %v317_v45, %s3209_s9 }
 0x3c2   :  { %v557_v8 = vpop.f32.mrf.mxu1 }
 0x3c3   :  { %v639_v9 = vmul.f32 0.17677669, %v557_v8 }
 0x3c4   :  { %v2860_v10 = vpop.f32.mrf.mxu1 }
 0x3c5   :  { %v643_v11 = vadd.f32 %v639_v9, %v3382_v6 }
 0x3c6   :  { %v633_v13 = vpop.f32.mrf.mxu1 }
 0x3c7   :  { %v640_v14 = vmul.f32 0.17677669, %v633_v13  ;;  %v652_v15 = vsel %vm645_vm8, %v643_v11, -inf }
 0x3c8   :  { %653 = vmax.xlane.f32.xlu0 %v652_v15  ;;  %v2865_v16 = vpop.f32.mrf.mxu1  ;;  %v2637_v15 = vld [vmem:[%s3632_s4] ss:$0 sm:$0xff] }
 0x3c9   :  { %v644_v17 = vadd.f32 %v640_v14, %v3386_v12 }
 0x3cb   :  { %v655_v18 = vsel %vm645_vm8, %v644_v17, -inf }
 0x3cc   :  { %656 = vmax.xlane.f32.xlu0 %v655_v18 }
 0x3dc   :  { %v651_v19 = vpop.xlane.xlu1 %650 }
 0x3dd   :  { %v659_v20 = vsub.f32 %v642_v59, %v651_v19  ;;  %v215_v59 = vld [vmem:[#allocation2 + $0x30] sm:$0xff] }
 0x3df   :  { %v664_v21 = vmul.f32 1.442695, %v659_v20 }
 0x3e0   :  { %v691_v22 = vpop.permute.xlu1 %690 }
 0x3e1   :  { %3078 = vpow2.f32 %v664_v21  ;;  %2867 = vmatpush3.msra.mxu1 %v691_v22 }
 0x3e2   :  { %2876 = vmatprep.subr.mxu1 %v3203_v1 }
 0x3e6   :  { %v648_v5 = vpop.xlane.xlu0 %647 }
 0x3e7   :  { %v658_v23 = vsub.f32 %v641_v2, %v648_v5 }
 0x3e9   :  { %v662_v24 = vmul.f32 1.442695, %v658_v23 }
 0x3eb   :  { %3080 = vpow2.f32 %v662_v24 }
 0x3ee   :  { %v3079_v25 = vpop.eup %3078 }
 0x3ef   :  { %v673_v26 = vsel %vm645_vm8, %v3079_v25, 0.0 }
 0x3f0   :  { %674 = vadd.xlane.f32.xlu0 %v673_v26 }
 0x3f8   :  { %v3081_v27 = vpop.eup %3080 }
 0x3f9   :  { %v670_v28 = vsel %vm645_vm8, %v3081_v27, 0.0 }
 0x3fa   :  { %671 = vadd.xlane.f32.xlu1 %v670_v28 }
 0x451   :  { %v654_v29 = vpop.xlane.xlu0 %653 }
 0x452   :  { %v660_v30 = vsub.f32 %v643_v11, %v654_v29 }
 0x454   :  { %v666_v32 = vmul.f32 1.442695, %v660_v30 }
 0x455   :  { %v657_v33 = vpop.xlane.xlu0 %656 }
 0x456   :  { %3082 = vpow2.f32 %v666_v32  ;;  %v661_v34 = vsub.f32 %v644_v17, %v657_v33  ;;  %v220_v32 = vld [vmem:[#allocation2 + $0x58] sm:$0xff]  ;;  %v219_v33 = vld [vmem:[#allocation2 + $0x50] sm:$0xff] }
 0x458   :  { %v668_v35 = vmul.f32 1.442695, %v661_v34  ;;  %v218_v34 = vld [vmem:[#allocation2 + $0x48] sm:$0xff] }
 0x45a   :  { %3084 = vpow2.f32 %v668_v35  ;;  %v217_v35 = vld [vmem:[#allocation2 + $0x40] sm:$0xff] }
 0x463   :  { %v3083_v36 = vpop.eup %3082 }
 0x464   :  { %v676_v37 = vsel %vm645_vm8, %v3083_v36, 0.0 }
 0x465   :  { %677 = vadd.xlane.f32.xlu1 %v676_v37  ;;  %v235_v37 = vld [vmem:[#allocation2 + $0xd0] sm:$0xff] }
 0x467   :  { %v3085_v38 = vpop.eup %3084 }
 0x468   :  { %v679_v39 = vsel %vm645_vm8, %v3085_v38, 0.0 }
 0x469   :  { %680 = vadd.xlane.f32.xlu0 %v679_v39  ;;  %v233_v39 = vld [vmem:[#allocation2 + $0xc0] sm:$0xff] }
 0x476   :  { %842 = vrot.lane.b32.xlu1 %v3335_v47, %s3209_s9 }
 0x479   :  { %v675_v46 = vpop.xlane.xlu0 %674 }
 0x47a   :  { %918 = vrot.lane.b32.xlu1 %v3344_v48, %s3209_s9 }
 0x47f   :  { %766 = vrot.lane.b32.xlu0 %v3326_v44, %s3209_s9 }
 0x483   :  { %v672_v40 = vpop.xlane.xlu1 %671 }
 0x484   :  { %3086 = vrcp.f32 %v672_v40  ;;  %v232_v40 = vld [vmem:[#allocation2 + $0xb8] sm:$0xff] }
 0x485   :  { %3088 = vrcp.f32 %v675_v46  ;;  %v229_v46 = vld [vmem:[#allocation2 + $0xa0] sm:$0xff] }
 0x491   :  { %v3087_v41 = vpop.eup %3086 }
 0x492   :  { %v686_v45 = vmul.f32 %v3087_v41, %v3081_v27  ;;  %v3089_v51 = vpop.eup %3088  ;;  %v231_v41 = vld [vmem:[#allocation2 + $0xb0] sm:$0xff] }
 0x493   :  { %v687_v44 = vmul.f32 %v3089_v51, %v3079_v25  ;;  %v225_v51 = vld [vmem:[#allocation2 + $0x80] sm:$0xff] }
 0x494   :  { %2869 = vmatmul.mubr.msk.f32.vlgmr.msra.gmra.mxu1 %vm645_vm8, %v686_v45  ;;  %v230_v45 = vld [vmem:[#allocation2 + $0xa8] sm:$0xff] }
 0x495   :  { %2878 = vmatprep.mubr.msk.f32.mxu1 %vm3206_vm6, %v3203_v1 }
 0x4ee   :  { %v678_v49 = vpop.xlane.xlu1 %677 }
 0x4ef   :  { %3090 = vrcp.f32 %v678_v49  ;;  %v228_v49 = vld [vmem:[#allocation2 + $0x98] sm:$0xff] }
 0x4f2   :  { %v681_v47 = vpop.xlane.xlu0 %680  ;;  %v843_v50 = vpop.permute.xlu1 %842 }
 0x4f3   :  { %3092 = vrcp.f32 %v681_v47  ;;  %2877 = vmatpush3.msra.mxu1 %v843_v50  ;;  %v227_v47 = vld [vmem:[#allocation2 + $0x90] sm:$0xff]  ;;  %v226_v50 = vld [vmem:[#allocation2 + $0x88] sm:$0xff] }
 0x4f4   :  { %2886 = vmatprep.subr.mxu1 %v216_v58 }
 0x4f6   :  { %v767_v48 = vpop.permute.xlu0 %766  ;;  %v919_v52 = vpop.permute.xlu1 %918 }
 0x4f7   :  { %2872 = vmatpush3.msra.mxu0 %v767_v48 }
 0x4f8   :  { %2874 = vmatmul.mubr.msk.f32.vlgmr.msra.gmra.mxu0 %vm645_vm8, %v687_v44  ;;  %2881 = vmatprep.subr.mxu0 %v3203_v1 }
 0x4f9   :  { %2882 = vmatpush3.msra.mxu0 %v919_v52  ;;  %2883 = vmatprep.mubr.msk.f32.mxu0 %vm3206_vm6, %v3203_v1 }
 0x4fa   :  { %2897 = vmatprep.subr.mxu0 %v220_v32 }
 0x4fc   :  { %v3091_v53 = vpop.eup %3090 }
 0x4fd   :  { %v688_v54 = vmul.f32 %v3091_v53, %v3083_v36  ;;  %v236_v36 = vld [vmem:[#allocation2 + $0xd8] sm:$0xff] }
 0x4ff   :  { %2879 = vmatmul.mubr.msk.f32.vlgmr.msra.gmra.mxu1 %vm645_vm8, %v688_v54 }
 0x500   :  { %v3093_v56 = vpop.eup %3092  ;;  %2887 = vmatpush3.msra.mxu1 %v216_v58  ;;  %v2640_v58 = vld [vmem:[%s3632_s4 + $0x1] ss:$0 sm:$0xff] }
 0x501   :  { %v689_v57 = vmul.f32 %v3093_v56, %v3085_v38  ;;  %2888 = vmatprep.subr.mxu1 %v215_v59  ;;  %v234_v38 = vld [vmem:[#allocation2 + $0xc8] sm:$0xff] }
 0x502   :  { %2889 = vmatpush3.msra.mxu1 %v215_v59 }
 0x503   :  { %2884 = vmatmul.mubr.msk.f32.vlgmr.msra.gmra.mxu0 %vm645_vm8, %v689_v57  ;;  %2890 = vmatprep.subr.mxu1 %v214_v63 }
 0x504   :  { %2891 = vmatpush3.msra.mxu1 %v214_v63  ;;  %2898 = vmatpush3.msra.mxu0 %v220_v32 }
 0x505   :  { %2892 = vmatprep.subr.mxu1 %v213_v0  ;;  %2899 = vmatprep.subr.mxu0 %v219_v33 }
 0x506   :  { %2893 = vmatpush3.msra.mxu1 %v213_v0  ;;  %2900 = vmatpush3.msra.mxu0 %v219_v33 }
 0x507   :  { %2901 = vmatprep.subr.mxu0 %v218_v34  ;;  %2908 = vmatprep.subr.mxu1 %v236_v36 }
 0x508   :  { %2902 = vmatpush3.msra.mxu0 %v218_v34 }
 0x509   :  { %2903 = vmatprep.subr.mxu0 %v217_v35 }
 0x50a   :  { %2904 = vmatpush3.msra.mxu0 %v217_v35 }
 0x554   :  { %v762_v60 = vpop.f32.mrf.mxu1 }
 0x556   :  { %v2870_v62 = vpop.f32.mrf.mxu1 }
 0x5b8   :  { %v838_v2 = vpop.f32.mrf.mxu0 }
 0x5ba   :  { %v2875_v3 = vpop.f32.mrf.mxu0 }
 0x5bf   :  { %v914_v4 = vpop.f32.mrf.mxu1 }
 0x5c0   :  { %996 = vrot.lane.b32.xlu0 %v914_v4, %s3210_s0 }
 0x5c1   :  { %v2880_v7 = vpop.f32.mrf.mxu1 }
 0x5c2   :  { %v224_v7 = vld [vmem:[#allocation2 + $0x78] sm:$0xff] }
 0x5c3   :  { %v990_v8 = vpop.f32.mrf.mxu0 }
 0x5c4   :  { %998 = vrot.lane.b32.xlu1 %v990_v8, %s3210_s0  ;;  %v223_v8 = vld [vmem:[#allocation2 + $0x70] sm:$0xff] }
 0x5c5   :  { %v2885_v9 = vpop.f32.mrf.mxu0 }
 0x5c6   :  { %v222_v9 = vld [vmem:[#allocation2 + $0x68] sm:$0xff] }
 0x632   :  { %v997_v10 = vpop.permute.xlu0 %996 }
 0x633   :  { %v1002_v11 = vsel %vm334_vm7, %v762_v60, %v997_v10  ;;  %v2641_v60 = vld [vmem:[%s3632_s4 + $0x2] ss:$0 sm:$0xff] }
 0x634   :  { %2894 = vmatprep.mubr.msk.f32.mxu1 %vm244_vm5, %v1002_v11  ;;  %v221_v10 = vld [vmem:[#allocation2 + $0x60] sm:$0xff] }
 0x635   :  { %v2642_v11 = vld [vmem:[%s3632_s4 + $0x3] ss:$0 sm:$0xff] }
 0x636   :  { %v999_v13 = vpop.permute.xlu1 %998 }
 0x637   :  { %v1003_v14 = vsel %vm334_vm7, %v838_v2, %v999_v13 }
 0x638   :  { %2895 = vmatmul.mubr.msk.f32.vlgmr.msra.gmra.mxu1 %vm244_vm5, %v1003_v14 }
 0x639   :  { %2909 = vmatpush3.msra.mxu1 %v236_v36  ;;  %v1340_v36 = vld [vmem:[#allocation2 + $0xf8] sm:$0xff] }
 0x63a   :  { %2910 = vmatprep.subr.mxu1 %v235_v37  ;;  %2943 = vmatprep.subr.mxu0 %v1340_v36 }
 0x63b   :  { %2911 = vmatpush3.msra.mxu1 %v235_v37  ;;  %v1339_v37 = vld [vmem:[#allocation2 + $0xf0] sm:$0xff] }
 0x63c   :  { %2912 = vmatprep.subr.mxu1 %v234_v38 }
 0x63d   :  { %2913 = vmatpush3.msra.mxu1 %v234_v38  ;;  %v1338_v38 = vld [vmem:[#allocation2 + $0xe8] sm:$0xff] }
 0x63e   :  { %2914 = vmatprep.subr.mxu1 %v233_v39 }
 0x63f   :  { %2915 = vmatpush3.msra.mxu1 %v233_v39  ;;  %v1337_v39 = vld [vmem:[#allocation2 + $0xe0] sm:$0xff] }
 0x640   :  { %2916 = vmatprep.subr.mxu1 %v232_v40 }
 0x641   :  { %2917 = vmatpush3.msra.mxu1 %v232_v40 }
 0x642   :  { %2918 = vmatprep.subr.mxu1 %v231_v41 }
 0x643   :  { %2919 = vmatpush3.msra.mxu1 %v231_v41 }
 0x644   :  { %2920 = vmatprep.subr.mxu1 %v230_v45 }
 0x645   :  { %2921 = vmatpush3.msra.mxu1 %v230_v45 }
 0x646   :  { %2922 = vmatprep.subr.mxu1 %v229_v46 }
 0x647   :  { %2923 = vmatpush3.msra.mxu1 %v229_v46 }
 0x648   :  { %2924 = vmatprep.subr.mxu1 %v228_v49 }
 0x649   :  { %2925 = vmatpush3.msra.mxu1 %v228_v49 }
 0x64a   :  { %2926 = vmatprep.subr.mxu1 %v227_v47 }
 0x64b   :  { %2927 = vmatpush3.msra.mxu1 %v227_v47 }
 0x64c   :  { %2928 = vmatprep.subr.mxu1 %v226_v50 }
 0x64d   :  { %2929 = vmatpush3.msra.mxu1 %v226_v50 }
 0x64e   :  { %2930 = vmatprep.subr.mxu1 %v225_v51 }
 0x64f   :  { %2931 = vmatpush3.msra.mxu1 %v225_v51  ;;  %v2646_v51 = vld [vmem:[%s3632_s4 + $0x5] ss:$0 sm:$0xff] }
 0x650   :  { %2932 = vmatprep.subr.mxu1 %v224_v7 }
 0x651   :  { %2933 = vmatpush3.msra.mxu1 %v224_v7 }
 0x652   :  { %2934 = vmatprep.subr.mxu1 %v223_v8 }
 0x653   :  { %2935 = vmatpush3.msra.mxu1 %v223_v8 }
 0x654   :  { %2936 = vmatprep.subr.mxu1 %v222_v9 }
 0x655   :  { %2937 = vmatpush3.msra.mxu1 %v222_v9 }
 0x656   :  { %2938 = vmatprep.subr.mxu1 %v221_v10 }
 0x657   :  { %2939 = vmatpush3.msra.mxu1 %v221_v10 }
 0x658   :  { %2984 = vmatprep.subr.mxu1 %v3203_v1 }
 0x6f8   :  { %v2896_v16 = vpop.f32.mrf.mxu1 }
 0x6f9   :  { %v1086_v17 = vadd.f32 %v2896_v16, %v2637_v15 }
 0x6fa   :  { %v1080_v18 = vpop.f32.mrf.mxu1 }
 0x6fb   :  { %v1081_v19 = vadd.f32 %v2637_v15, %v1080_v18  ;;  %v1090_v20 = vadd.f32 %v1086_v17, %v3316_v43 }
 0x6fd   :  { %v1094_v21 = vsel %vm244_vm5, %v1090_v20, 0.0  ;;  %v1089_v22 = vadd.f32 %v1081_v19, %v3314_v42  ;;  %v2645_v19 = vld [vmem:[%s3632_s4 + $0x4] ss:$0 sm:$0xff] }
 0x6fe   :  { %1095 = vadd.xlane.f32.xlu1 %v1094_v21 }
 0x6ff   :  { %v1091_v5 = vsel %vm244_vm5, %v1089_v22, 0.0 }
 0x700   :  { %1092 = vadd.xlane.f32.xlu0 %v1091_v5 }
 0x787   :  { %v1096_v23 = vpop.xlane.xlu1 %1095 }
 0x788   :  { %v1099_v24 = vmul.f32 0.03125, %v1096_v23 }
 0x789   :  { %v1093_v25 = vpop.xlane.xlu0 %1092 }
 0x78a   :  { %v1098_v26 = vmul.f32 0.03125, %v1093_v25  ;;  %v3424_v27 = vsub.f32 %v1090_v20, %v1099_v24 }
 0x78c   :  { %v3426_v28 = vsub.f32 %v1089_v22, %v1098_v26  ;;  %v1103_v42 = vmul.f32 %v3424_v27, %v3424_v27 }
 0x78e   :  { %v1102_v29 = vmul.f32 %v3426_v28, %v3426_v28  ;;  %v1107_v30 = vsel %vm244_vm5, %v1103_v42, 0.0 }
 0x790   :  { %v1104_v43 = vsel %vm244_vm5, %v1102_v29, 0.0 }
 0x791   :  { %1105 = vadd.xlane.f32.xlu0 %v1104_v43 }
 0x795   :  { %1108 = vadd.xlane.f32.xlu0 %v1107_v30 }
 0x81a   :  { %v1106_v48 = vpop.xlane.xlu0 %1105 }
 0x81b   :  { %v1110_v44 = vmul.f32 0.03125, %v1106_v48 }
 0x81d   :  { %v1112_v52 = vadd.f32 1e-05, %v1110_v44 }
 0x81e   :  { %v1109_v53 = vpop.xlane.xlu0 %1108 }
 0x81f   :  { %3094 = vrsqrt.f32 %v1112_v52  ;;  %v1111_v54 = vmul.f32 0.03125, %v1109_v53 }
 0x821   :  { %v1113_v56 = vadd.f32 1e-05, %v1111_v54  ;;  %v2647_v54 = vld [vmem:[%s3632_s4 + $0x6] ss:$0 sm:$0xff] }
 0x823   :  { %3096 = vrsqrt.f32 %v1113_v56 }
 0x82c   :  { %v3095_v57 = vpop.eup %3094 }
 0x82d   :  { %v1116_v59 = vmul.f32 %v3095_v57, %v3426_v28 }
 0x82f   :  { %v1122_v62 = vmul.f32 %v2640_v58, %v1116_v59 }
 0x830   :  { %v3097_v63 = vpop.eup %3096 }
 0x831   :  { %v1117_v0 = vmul.f32 %v3097_v63, %v3424_v27  ;;  %v1128_v2 = vadd.f32 %v2641_v60, %v1122_v62 }
 0x833   :  { %v1123_v3 = vmul.f32 %v2640_v58, %v1117_v0  ;;  %2905 = vmatprep.mubr.msk.f32.mxu0 %vm244_vm5, %v1128_v2 }
 0x835   :  { %v1129_v4 = vadd.f32 %v2641_v60, %v1123_v3 }
 0x837   :  { %2906 = vmatmul.mubr.msk.f32.vlgmr.msra.gmra.mxu0 %vm244_vm5, %v1129_v4 }
 0x838   :  { %2944 = vmatpush3.msra.mxu0 %v1340_v36 }
 0x839   :  { %2945 = vmatprep.subr.mxu0 %v1339_v37 }
 0x83a   :  { %2946 = vmatpush3.msra.mxu0 %v1339_v37 }
 0x83b   :  { %2947 = vmatprep.subr.mxu0 %v1338_v38 }
 0x83c   :  { %2948 = vmatpush3.msra.mxu0 %v1338_v38 }
 0x83d   :  { %2949 = vmatprep.subr.mxu0 %v1337_v39 }
 0x83e   :  { %2950 = vmatpush3.msra.mxu0 %v1337_v39 }
 0x83f   :  { %2954 = vmatprep.subr.mxu0 %v3203_v1 }
 0x8f7   :  { %v2907_v13 = vpop.f32.mrf.mxu0 }
 0x8f8   :  { %v1212_v14 = vadd.f32 %v2907_v13, %v2642_v11 }
 0x8f9   :  { %v1206_v15 = vpop.f32.mrf.mxu0 }
 0x8fa   :  { %v1207_v16 = vadd.f32 %v2642_v11, %v1206_v15  ;;  %v1216_v18 = vmax.f32 %v1212_v14, 0.0 }
 0x8fc   :  { %v1215_v17 = vmax.f32 %v1207_v16, 0.0 }
 0x8fe   :  { %2940 = vmatprep.mubr.f32.mxu1 %v1215_v17 }
 0x8ff   :  { %2941 = vmatmul.mubr.f32.vlgmr.msra.gmra.mxu1 %v1216_v18 }
 0x900   :  { %2986 = vmatprep.mubr.msk.f32.mxu1 %vm3206_vm6, %v3203_v1 }
 0x9bf   :  { %v2942_v20 = vpop.f32.mrf.mxu1 }
 0x9c0   :  { %v1293_v21 = vadd.f32 %v2942_v20, %v2645_v19 }
 0x9c1   :  { %v1287_v22 = vpop.f32.mrf.mxu1 }
 0x9c2   :  { %v1288_v5 = vadd.f32 %v2645_v19, %v1287_v22  ;;  %v1297_v23 = vadd.f32 %v1293_v21, %v1129_v4 }
 0x9c4   :  { %v1301_v24 = vsel %vm244_vm5, %v1297_v23, 0.0  ;;  %v1296_v25 = vadd.f32 %v1288_v5, %v1128_v2 }
 0x9c5   :  { %1302 = vadd.xlane.f32.xlu0 %v1301_v24 }
 0x9c6   :  { %v1298_v26 = vsel %vm244_vm5, %v1296_v25, 0.0 }
 0x9c7   :  { %1299 = vadd.xlane.f32.xlu1 %v1298_v26 }
 0xa4e   :  { %v1303_v27 = vpop.xlane.xlu0 %1302 }
 0xa4f   :  { %v1305_v28 = vmul.f32 0.03125, %v1303_v27 }
 0xa50   :  { %v1300_v29 = vpop.xlane.xlu1 %1299 }
 0xa51   :  { %v1307_v43 = vsub.f32 %v1297_v23, %v1305_v28  ;;  %v1304_v42 = vmul.f32 0.03125, %v1300_v29 }
 0xa53   :  { %v1306_v30 = vsub.f32 %v1296_v25, %v1304_v42  ;;  %v1309_v32 = vmul.f32 %v1307_v43, %v1307_v43 }
 0xa55   :  { %v1313_v33 = vsel %vm244_vm5, %v1309_v32, 0.0  ;;  %v1308_v34 = vmul.f32 %v1306_v30, %v1306_v30 }
 0xa56   :  { %1314 = vadd.xlane.f32.xlu0 %v1313_v33 }
 0xa57   :  { %v1310_v35 = vsel %vm244_vm5, %v1308_v34, 0.0 }
 0xa58   :  { %1311 = vadd.xlane.f32.xlu1 %v1310_v35 }
 0xadf   :  { %v1315_v40 = vpop.xlane.xlu0 %1314 }
 0xae0   :  { %v1317_v41 = vmul.f32 0.03125, %v1315_v40 }
 0xae1   :  { %v1312_v45 = vpop.xlane.xlu1 %1311 }
 0xae2   :  { %v1319_v46 = vadd.f32 1e-05, %v1317_v41  ;;  %v1316_v49 = vmul.f32 0.03125, %v1312_v45 }
 0xae4   :  { %3098 = vrsqrt.f32 %v1319_v46  ;;  %v1318_v47 = vadd.f32 1e-05, %v1316_v49 }
 0xae6   :  { %3100 = vrsqrt.f32 %v1318_v47 }
 0xaf1   :  { %v3099_v50 = vpop.eup %3098 }
 0xaf2   :  { %v1323_v48 = vmul.f32 %v3099_v50, %v1307_v43 }
 0xaf3   :  { %v3101_v44 = vpop.eup %3100 }
 0xaf4   :  { %v1322_v52 = vmul.f32 %v3101_v44, %v1306_v30  ;;  %v1329_v53 = vmul.f32 %v2646_v51, %v1323_v48 }
 0xaf6   :  { %v1328_v56 = vmul.f32 %v2646_v51, %v1322_v52  ;;  %v3466_v58 = vadd.f32 %v2647_v54, %v1329_v53 }
 0xaf8   :  { %v3464_v57 = vadd.f32 %v2647_v54, %v1328_v56 }
 0xafa   :  { %2951 = vmatprep.mubr.msk.f32.mxu0 %vm244_vm5, %v3464_v57 }
 0xafb   :  { %2952 = vmatmul.mubr.msk.f32.vlgmr.msra.gmra.mxu0 %vm244_vm5, %v3466_v58 }
 0xafc   :  { %2956 = vmatprep.mubr.msk.f32.mxu0 %vm3206_vm6, %v3203_v1 }
 0xbbb   :  { %v3474_v59 = vpop.f32.mrf.mxu0 }
 0xbbc   :  { %1458 = vrot.lane.b32.xlu0 %v3474_v59, %s3208_s8 }
 0xbbd   :  { %v1445_v60 = vpop.f32.mrf.mxu0 }
 0xbbe   :  { %1456 = vrot.lane.b32.xlu1 %v1445_v60, %s3208_s8 }
 0xbc2   :  { %1460 = vrot.lane.b32.xlu1 %v1445_v60, %s3207_s3 }
 0xbc6   :  { %1536 = vrot.lane.b32.xlu1 %v3474_v59, %s3207_s3 }
 0xc2e   :  { %v3482_v62 = vpop.permute.xlu0 %1458 }
 0xc2f   :  { %1688 = vrot.lane.b32.xlu1 %v3482_v62, %s3207_s3 }
 0xc30   :  { %v3486_v63 = vpop.permute.xlu1 %1456 }
 0xc31   :  { %1612 = vrot.lane.b32.xlu0 %v3486_v63, %s3207_s3 }
 0xc34   :  { %v1461_v0 = vpop.permute.xlu1 %1460 }
 0xc35   :  { %2955 = vmatpush3.xpose.msk.msra.mxu0 %vm334_vm7, %v1461_v0  ;;  %v1344_v0 = vld [vmem:[#allocation2 + $0x118] sm:$0xff] }
 0xc36   :  { %2959 = vmatprep.subr.mxu0 %v3203_v1 }
 0xc38   :  { %2957 = vmatmul.mubr.msk.f32.vlgmr.msra.gmra.mxu0 %vm334_vm7, %v1445_v60  ;;  %v1537_v2 = vpop.permute.xlu1 %1536 }
 0xc39   :  { %2960 = vmatpush3.xpose.msk.msra.mxu0 %vm334_vm7, %v1537_v2  ;;  %2961 = vmatprep.mubr.msk.f32.mxu0 %vm3206_vm6, %v3203_v1  ;;  %v1343_v2 = vld [vmem:[#allocation2 + $0x110] sm:$0xff] }
 0xc3a   :  { %2964 = vmatprep.subr.mxu0 %v3203_v1 }
 0xc3c   :  { %2962 = vmatmul.mubr.msk.f32.vlgmr.msra.gmra.mxu0 %vm334_vm7, %v3474_v59 }
 0xc3d   :  { %2966 = vmatprep.mubr.msk.f32.mxu0 %vm3206_vm6, %v3203_v1 }
 0xca1   :  { %v1689_v4 = vpop.permute.xlu1 %1688 }
 0xca3   :  { %v1613_v3 = vpop.permute.xlu0 %1612 }
 0xca4   :  { %2965 = vmatpush3.xpose.msk.msra.mxu0 %vm334_vm7, %v1613_v3 }
 0xca5   :  { %2969 = vmatprep.subr.mxu0 %v3203_v1 }
 0xca7   :  { %2967 = vmatmul.mubr.msk.f32.vlgmr.msra.gmra.mxu0 %vm334_vm7, %v3486_v63 }
 0xca8   :  { %2970 = vmatpush3.xpose.msk.msra.mxu0 %vm334_vm7, %v1689_v4  ;;  %2971 = vmatprep.mubr.msk.f32.mxu0 %vm3206_vm6, %v3203_v1 }
 0xca9   :  { %2974 = vmatprep.subr.mxu0 %v3203_v1 }
 0xcab   :  { %2972 = vmatmul.mubr.msk.f32.vlgmr.msra.gmra.mxu0 %vm334_vm7, %v3482_v62 }
 0xcac   :  { %2976 = vmatprep.mubr.msk.f32.mxu0 %vm3206_vm6, %v3203_v1 }
 0xcf8   :  { %v1532_v7 = vpop.f32.mrf.mxu0 }
 0xcf9   :  { %v1764_v8 = vmul.f32 0.17677669, %v1532_v7  ;;  %v1342_v7 = vld [vmem:[#allocation2 + $0x108] sm:$0xff] }
 0xcfa   :  { %v2958_v9 = vpop.f32.mrf.mxu0 }
 0xcfb   :  { %v1768_v10 = vadd.f32 %v1764_v8, %v3376_v61  ;;  %v1341_v8 = vld [vmem:[#allocation2 + $0x100] sm:$0xff] }
 0xcfc   :  { %v1608_v11 = vpop.f32.mrf.mxu0 }
 0xcfd   :  { %v1765_v13 = vmul.f32 0.17677669, %v1608_v11  ;;  %v1772_v14 = vsel %vm645_vm8, %v1768_v10, -inf }
 0xcfe   :  { %1773 = vmax.xlane.f32.xlu0 %v1772_v14  ;;  %v2963_v15 = vpop.f32.mrf.mxu0 }
 0xcff   :  { %v1769_v16 = vadd.f32 %v1765_v13, %v3371_v55 }
 0xd01   :  { %v1775_v17 = vsel %vm645_vm8, %v1769_v16, -inf }
 0xd02   :  { %1776 = vmax.xlane.f32.xlu1 %v1775_v17 }
 0xd13   :  { %1816 = vrot.lane.b32.xlu1 %v1445_v60, %s3209_s9 }
 0xd67   :  { %v1684_v18 = vpop.f32.mrf.mxu0 }
 0xd68   :  { %v1766_v19 = vmul.f32 0.17677669, %v1684_v18 }
 0xd69   :  { %v2968_v20 = vpop.f32.mrf.mxu0 }
 0xd6a   :  { %v1770_v21 = vadd.f32 %v1766_v19, %v3382_v6  ;;  %v2669_v20 = vld [vmem:[%s3632_s4 + $0x8] ss:$0 sm:$0xff] }
 0xd6b   :  { %v1760_v22 = vpop.f32.mrf.mxu0 }
 0xd6c   :  { %v1767_v61 = vmul.f32 0.17677669, %v1760_v22  ;;  %v1778_v5 = vsel %vm645_vm8, %v1770_v21, -inf }
 0xd6d   :  { %1779 = vmax.xlane.f32.xlu0 %v1778_v5  ;;  %v2973_v23 = vpop.f32.mrf.mxu0 }
 0xd6e   :  { %v1771_v24 = vadd.f32 %v1767_v61, %v3386_v12 }
 0xd70   :  { %v1781_v55 = vsel %vm645_vm8, %v1771_v24, -inf }
 0xd71   :  { %1782 = vmax.xlane.f32.xlu0 %v1781_v55 }
 0xd87   :  { %v1774_v25 = vpop.xlane.xlu0 %1773 }
 0xd88   :  { %v1784_v26 = vsub.f32 %v1768_v10, %v1774_v25 }
 0xd8a   :  { %v1788_v27 = vmul.f32 1.442695, %v1784_v26 }
 0xd8b   :  { %v1777_v28 = vpop.xlane.xlu1 %1776 }
 0xd8c   :  { %3102 = vpow2.f32 %v1788_v27  ;;  %v1785_v29 = vsub.f32 %v1769_v16, %v1777_v28 }
 0xd8e   :  { %v1790_v43 = vmul.f32 1.442695, %v1785_v29 }
 0xd8f   :  { %v1817_v42 = vpop.permute.xlu1 %1816 }
 0xd90   :  { %3104 = vpow2.f32 %v1790_v43  ;;  %2975 = vmatpush3.msra.mxu0 %v1817_v42 }
 0xd91   :  { %2979 = vmatprep.subr.mxu0 %v3203_v1 }
 0xd99   :  { %v3103_v6 = vpop.eup %3102 }
 0xd9a   :  { %v1796_v30 = vsel %vm645_vm8, %v3103_v6, 0.0 }
 0xd9b   :  { %1797 = vadd.xlane.f32.xlu1 %v1796_v30 }
 0xd9d   :  { %v3105_v12 = vpop.eup %3104 }
 0xd9e   :  { %v1799_v32 = vsel %vm645_vm8, %v3105_v12, 0.0 }
 0xd9f   :  { %1800 = vadd.xlane.f32.xlu0 %v1799_v32  ;;  %v1347_v32 = vld [vmem:[#allocation2 + $0x130] sm:$0xff] }
 0xdf6   :  { %v1780_v33 = vpop.xlane.xlu0 %1779 }
 0xdf7   :  { %v1786_v34 = vsub.f32 %v1770_v21, %v1780_v33  ;;  %v1346_v33 = vld [vmem:[#allocation2 + $0x128] sm:$0xff] }
 0xdf9   :  { %v1792_v35 = vmul.f32 1.442695, %v1786_v34  ;;  %v1345_v34 = vld [vmem:[#allocation2 + $0x120] sm:$0xff] }
 0xdfa   :  { %v1783_v36 = vpop.xlane.xlu0 %1782 }
 0xdfb   :  { %3106 = vpow2.f32 %v1792_v35  ;;  %v1787_v37 = vsub.f32 %v1771_v24, %v1783_v36  ;;  %v1364_v35 = vld [vmem:[#allocation2 + $0x1b8] sm:$0xff]  ;;  %v1363_v36 = vld [vmem:[#allocation2 + $0x1b0] sm:$0xff] }
 0xdfd   :  { %v1794_v38 = vmul.f32 1.442695, %v1787_v37  ;;  %v1362_v37 = vld [vmem:[#allocation2 + $0x1a8] sm:$0xff] }
 0xdff   :  { %3108 = vpow2.f32 %v1794_v38  ;;  %v1361_v38 = vld [vmem:[#allocation2 + $0x1a0] sm:$0xff] }
 0xe08   :  { %v3107_v39 = vpop.eup %3106 }
 0xe09   :  { %v1802_v40 = vsel %vm645_vm8, %v3107_v39, 0.0 }
 0xe0a   :  { %1803 = vadd.xlane.f32.xlu1 %v1802_v40  ;;  %v1359_v40 = vld [vmem:[#allocation2 + $0x190] sm:$0xff] }
 0xe0c   :  { %v3109_v41 = vpop.eup %3108 }
 0xe0d   :  { %v1805_v45 = vsel %vm645_vm8, %v3109_v41, 0.0 }
 0xe0e   :  { %1806 = vadd.xlane.f32.xlu0 %v1805_v45  ;;  %v1357_v45 = vld [vmem:[#allocation2 + $0x180] sm:$0xff] }
 0xe1b   :  { %1968 = vrot.lane.b32.xlu1 %v3486_v63, %s3209_s9 }
 0xe1f   :  { %2044 = vrot.lane.b32.xlu1 %v3482_v62, %s3209_s9 }
 0xe24   :  { %1892 = vrot.lane.b32.xlu0 %v3474_v59, %s3209_s9  ;;  %v1798_v46 = vpop.xlane.xlu1 %1797 }
 0xe25   :  { %3110 = vrcp.f32 %v1798_v46  ;;  %v1356_v46 = vld [vmem:[#allocation2 + $0x178] sm:$0xff] }
 0xe28   :  { %v1801_v50 = vpop.xlane.xlu0 %1800 }
 0xe29   :  { %3112 = vrcp.f32 %v1801_v50  ;;  %v1353_v50 = vld [vmem:[#allocation2 + $0x160] sm:$0xff] }
 0xe32   :  { %v3111_v49 = vpop.eup %3110 }
 0xe33   :  { %v1812_v47 = vmul.f32 %v3111_v49, %v3103_v6  ;;  %v1355_v49 = vld [vmem:[#allocation2 + $0x170] sm:$0xff] }
 0xe35   :  { %2977 = vmatmul.mubr.msk.f32.vlgmr.msra.gmra.mxu0 %vm645_vm8, %v1812_v47  ;;  %v1354_v47 = vld [vmem:[#allocation2 + $0x168] sm:$0xff] }
 0xe36   :  { %2981 = vmatprep.mubr.msk.f32.mxu0 %vm3206_vm6, %v3203_v1  ;;  %v3113_v52 = vpop.eup %3112 }
 0xe37   :  { %v1813_v54 = vmul.f32 %v3113_v52, %v3105_v12  ;;  %v1348_v12 = vld [vmem:[#allocation2 + $0x138] sm:$0xff] }
 0xe93   :  { %v1804_v51 = vpop.xlane.xlu1 %1803 }
 0xe94   :  { %3114 = vrcp.f32 %v1804_v51 }
 0xe97   :  { %v1807_v48 = vpop.xlane.xlu0 %1806  ;;  %v1969_v44 = vpop.permute.xlu1 %1968 }
 0xe98   :  { %3116 = vrcp.f32 %v1807_v48  ;;  %2985 = vmatpush3.msra.mxu1 %v1969_v44 }
 0xe99   :  { %2994 = vmatprep.subr.mxu1 %v1344_v0 }
 0xe9b   :  { %v1893_v53 = vpop.permute.xlu0 %1892  ;;  %v2045_v56 = vpop.permute.xlu1 %2044 }
 0xe9c   :  { %2980 = vmatpush3.msra.mxu0 %v1893_v53 }
 0xe9d   :  { %2982 = vmatmul.mubr.msk.f32.vlgmr.msra.gmra.mxu0 %vm645_vm8, %v1813_v54  ;;  %2989 = vmatprep.subr.mxu0 %v3203_v1 }
 0xe9e   :  { %2990 = vmatpush3.msra.mxu0 %v2045_v56  ;;  %2991 = vmatprep.mubr.msk.f32.mxu0 %vm3206_vm6, %v3203_v1 }
 0xe9f   :  { %3005 = vmatprep.subr.mxu0 %v1348_v12 }
 0xea1   :  { %v3115_v59 = vpop.eup %3114 }
 0xea2   :  { %v1814_v60 = vmul.f32 %v3115_v59, %v3107_v39  ;;  %v1360_v39 = vld [vmem:[#allocation2 + $0x198] sm:$0xff]  ;;  %v2672_v59 = vld [vmem:[%s3632_s4 + $0x9] ss:$0 sm:$0xff] }
 0xea4   :  { %2987 = vmatmul.mubr.msk.f32.vlgmr.msra.gmra.mxu1 %vm645_vm8, %v1814_v60 }
 0xea5   :  { %v3117_v62 = vpop.eup %3116  ;;  %2995 = vmatpush3.msra.mxu1 %v1344_v0 }
 0xea6   :  { %v1815_v63 = vmul.f32 %v3117_v62, %v3109_v41  ;;  %2996 = vmatprep.subr.mxu1 %v1343_v2  ;;  %v1358_v41 = vld [vmem:[#allocation2 + $0x188] sm:$0xff] }
 0xea7   :  { %2997 = vmatpush3.msra.mxu1 %v1343_v2  ;;  %v2673_v62 = vld [vmem:[%s3632_s4 + $0xa] ss:$0 sm:$0xff] }
 0xea8   :  { %2992 = vmatmul.mubr.msk.f32.vlgmr.msra.gmra.mxu0 %vm645_vm8, %v1815_v63  ;;  %2998 = vmatprep.subr.mxu1 %v1342_v7 }
 0xea9   :  { %2999 = vmatpush3.msra.mxu1 %v1342_v7  ;;  %3006 = vmatpush3.msra.mxu0 %v1348_v12  ;;  %v2464_v12 = vld [vmem:[%s3630_s2 + $0x90] sm:$0xff] }
 0xeaa   :  { %3000 = vmatprep.subr.mxu1 %v1341_v8  ;;  %3007 = vmatprep.subr.mxu0 %v1347_v32 }
 0xeab   :  { %3001 = vmatpush3.msra.mxu1 %v1341_v8  ;;  %3008 = vmatpush3.msra.mxu0 %v1347_v32  ;;  %v1352_v8 = vld [vmem:[#allocation2 + $0x158] sm:$0xff]  ;;  %v2463_v32 = vld [vmem:[%s3630_s2 + $0x88] sm:$0xff] }
 0xeac   :  { %3009 = vmatprep.subr.mxu0 %v1346_v33  ;;  %3016 = vmatprep.subr.mxu1 %v1364_v35 }
 0xead   :  { %3010 = vmatpush3.msra.mxu0 %v1346_v33  ;;  %v2462_v33 = vld [vmem:[%s3630_s2 + $0x80] sm:$0xff] }
 0xeae   :  { %3011 = vmatprep.subr.mxu0 %v1345_v34 }
 0xeaf   :  { %3012 = vmatpush3.msra.mxu0 %v1345_v34  ;;  %v2461_v34 = vld [vmem:[%s3630_s2 + $0x78] sm:$0xff] }
 0xeb0   :  { %3051 = vmatprep.subr.mxu0 %v3203_v1 }
 0xef5   :  { %v1888_v3 = vpop.f32.mrf.mxu0 }
 0xef7   :  { %v2978_v4 = vpop.f32.mrf.mxu0 }
 0xf5d   :  { %v1964_v9 = vpop.f32.mrf.mxu0 }
 0xf5f   :  { %v2983_v10 = vpop.f32.mrf.mxu0 }
 0xf60   :  { %v1350_v10 = vld [vmem:[#allocation2 + $0x148] sm:$0xff] }
 0xf64   :  { %v2040_v11 = vpop.f32.mrf.mxu1 }
 0xf65   :  { %2122 = vrot.lane.b32.xlu0 %v2040_v11, %s3210_s0  ;;  %v1349_v11 = vld [vmem:[#allocation2 + $0x140] sm:$0xff] }
 0xf66   :  { %v2988_v13 = vpop.f32.mrf.mxu1 }
 0xf67   :  { %v2674_v13 = vld [vmem:[%s3632_s4 + $0xb] ss:$0 sm:$0xff] }
 0xf68   :  { %v2116_v14 = vpop.f32.mrf.mxu0 }
 0xf69   :  { %2124 = vrot.lane.b32.xlu1 %v2116_v14, %s3210_s0 }
 0xf6a   :  { %v2993_v15 = vpop.f32.mrf.mxu0 }
 0xfd7   :  { %v2123_v16 = vpop.permute.xlu0 %2122 }
 0xfd8   :  { %v2128_v17 = vsel %vm334_vm7, %v1888_v3, %v2123_v16 }
 0xfd9   :  { %3002 = vmatprep.mubr.msk.f32.mxu1 %vm244_vm5, %v2128_v17 }
 0xfdb   :  { %v2125_v18 = vpop.permute.xlu1 %2124 }
 0xfdc   :  { %v2129_v19 = vsel %vm334_vm7, %v1964_v9, %v2125_v18  ;;  %v1351_v9 = vld [vmem:[#allocation2 + $0x150] sm:$0xff] }
 0xfdd   :  { %3003 = vmatmul.mubr.msk.f32.vlgmr.msra.gmra.mxu1 %vm244_vm5, %v2129_v19 }
 0xfde   :  { %3017 = vmatpush3.msra.mxu1 %v1364_v35 }
 0xfdf   :  { %3018 = vmatprep.subr.mxu1 %v1363_v36 }
 0xfe0   :  { %3019 = vmatpush3.msra.mxu1 %v1363_v36 }
 0xfe1   :  { %3020 = vmatprep.subr.mxu1 %v1362_v37 }
 0xfe2   :  { %3021 = vmatpush3.msra.mxu1 %v1362_v37 }
 0xfe3   :  { %3022 = vmatprep.subr.mxu1 %v1361_v38 }
 0xfe4   :  { %3023 = vmatpush3.msra.mxu1 %v1361_v38 }
 0xfe5   :  { %3024 = vmatprep.subr.mxu1 %v1360_v39 }
 0xfe6   :  { %3025 = vmatpush3.msra.mxu1 %v1360_v39 }
 0xfe7   :  { %3026 = vmatprep.subr.mxu1 %v1359_v40 }
 0xfe8   :  { %3027 = vmatpush3.msra.mxu1 %v1359_v40 }
 0xfe9   :  { %3028 = vmatprep.subr.mxu1 %v1358_v41 }
 0xfea   :  { %3029 = vmatpush3.msra.mxu1 %v1358_v41 }
 0xfeb   :  { %3030 = vmatprep.subr.mxu1 %v1357_v45 }
 0xfec   :  { %3031 = vmatpush3.msra.mxu1 %v1357_v45  ;;  %v2678_v45 = vld [vmem:[%s3632_s4 + $0xd] ss:$0 sm:$0xff] }
 0xfed   :  { %3032 = vmatprep.subr.mxu1 %v1356_v46 }
 0xfee   :  { %3033 = vmatpush3.msra.mxu1 %v1356_v46 }
 0xfef   :  { %3034 = vmatprep.subr.mxu1 %v1355_v49 }
 0xff0   :  { %3035 = vmatpush3.msra.mxu1 %v1355_v49 }
 0xff1   :  { %3036 = vmatprep.subr.mxu1 %v1354_v47 }
 0xff2   :  { %3037 = vmatpush3.msra.mxu1 %v1354_v47  ;;  %v2679_v47 = vld [vmem:[%s3632_s4 + $0xe] ss:$0 sm:$0xff] }
 0xff3   :  { %3038 = vmatprep.subr.mxu1 %v1353_v50 }
 0xff4   :  { %3039 = vmatpush3.msra.mxu1 %v1353_v50 }
 0xff5   :  { %3040 = vmatprep.subr.mxu1 %v1352_v8 }
 0xff6   :  { %3041 = vmatpush3.msra.mxu1 %v1352_v8 }
 0xff7   :  { %3042 = vmatprep.subr.mxu1 %v1351_v9 }
 0xff8   :  { %3043 = vmatpush3.msra.mxu1 %v1351_v9 }
 0xff9   :  { %3044 = vmatprep.subr.mxu1 %v1350_v10 }
 0xffa   :  { %3045 = vmatpush3.msra.mxu1 %v1350_v10  ;;  %v2568_v10 = vld [vmem:[%s3629_s1] sm:$0x3]  ;;  %s3212_s1 = smov [#allocation5]  }
 0xffb   :  { %3046 = vmatprep.subr.mxu1 %v1349_v11  ;;  %s2596_s20 = sshll.u32 %s3212_s1, 4  ;;  %s2597_s20 = int_to_ptr.vmem [resolvable:$true] %s2596_s20 }
 0xffc   :  { %3047 = vmatpush3.msra.mxu1 %v1349_v11  ;;  %v3211_v11 = vmov 0   ;;  %s3154_s21 = scalar_lea.vmem %s2597_s20, 32  ;;  %p3159_p6 = scmp.lt.s32.totalorder %s2597_s20, %s2597_s20 }
 0xffd   :  { %3076 = vset.pattern.permute.xlu1 %v3211_v11  ;;  %3077 = vset.pattern.permute.xlu0 %v3211_v11  ;;  %p3155_p5 = scmp.ne.s32.totalorder %s2597_s20, %s3154_s21  ;;  %p3160_p7 = scmp.lt.s32.totalorder %s3154_s21, %s3154_s21 }
 0xfff   :  { %p3161_p8 = por %p3160_p7, %p3159_p6 }
0x1001   :  { %p3162_p9 = pnand %p3161_p8, %p3155_p5 }
0x109d   :  { %v3004_v21 = vpop.f32.mrf.mxu1 }
0x109e   :  { %v2212_v22 = vadd.f32 %v3004_v21, %v2669_v20 }
0x109f   :  { %v2206_v61 = vpop.f32.mrf.mxu1 }
0x10a0   :  { %v2207_v5 = vadd.f32 %v2669_v20, %v2206_v61  ;;  %v2216_v23 = vadd.f32 %v2212_v22, %v3466_v58  ;;  %v2677_v20 = vld [vmem:[%s3632_s4 + $0xc] ss:$0 sm:$0xff] }
0x10a2   :  { %v2220_v24 = vsel %vm244_vm5, %v2216_v23, 0.0  ;;  %v2215_v55 = vadd.f32 %v2207_v5, %v3464_v57 }
0x10a3   :  { %2221 = vadd.xlane.f32.xlu1 %v2220_v24 }
0x10a4   :  { %v2217_v25 = vsel %vm244_vm5, %v2215_v55, 0.0 }
0x10a5   :  { %2218 = vadd.xlane.f32.xlu0 %v2217_v25 }
0x112c   :  { %v2222_v26 = vpop.xlane.xlu1 %2221 }
0x112d   :  { %v2224_v27 = vmul.f32 0.03125, %v2222_v26 }
0x112e   :  { %v2219_v28 = vpop.xlane.xlu0 %2218 }
0x112f   :  { %v2223_v29 = vmul.f32 0.03125, %v2219_v28  ;;  %v3555_v43 = vsub.f32 %v2216_v23, %v2224_v27 }
0x1131   :  { %v3557_v42 = vsub.f32 %v2215_v55, %v2223_v29  ;;  %v2228_v57 = vmul.f32 %v3555_v43, %v3555_v43 }
0x1133   :  { %v2227_v6 = vmul.f32 %v3557_v42, %v3557_v42  ;;  %v2232_v30 = vsel %vm244_vm5, %v2228_v57, 0.0 }
0x1135   :  { %v2229_v58 = vsel %vm244_vm5, %v2227_v6, 0.0 }
0x1136   :  { %2230 = vadd.xlane.f32.xlu0 %v2229_v58 }
0x113a   :  { %2233 = vadd.xlane.f32.xlu0 %v2232_v30 }
0x11bf   :  { %v2231_v51 = vpop.xlane.xlu0 %2230 }
0x11c0   :  { %v2235_v48 = vmul.f32 0.03125, %v2231_v51 }
0x11c2   :  { %v2237_v44 = vadd.f32 1e-05, %v2235_v48 }
0x11c3   :  { %v2234_v52 = vpop.xlane.xlu0 %2233 }
0x11c4   :  { %3118 = vrsqrt.f32 %v2237_v44  ;;  %v2236_v53 = vmul.f32 0.03125, %v2234_v52 }
0x11c6   :  { %v2238_v54 = vadd.f32 1e-05, %v2236_v53 }
0x11c8   :  { %3120 = vrsqrt.f32 %v2238_v54 }
0x11d1   :  { %v3119_v56 = vpop.eup %3118 }
0x11d2   :  { %v2241_v60 = vmul.f32 %v3119_v56, %v3557_v42 }
0x11d4   :  { %v2247_v63 = vmul.f32 %v2672_v59, %v2241_v60 }
0x11d5   :  { %v3121_v0 = vpop.eup %3120 }
0x11d6   :  { %v2242_v2 = vmul.f32 %v3121_v0, %v3555_v43  ;;  %v2253_v3 = vadd.f32 %v2673_v62, %v2247_v63 }
0x11d8   :  { %v2248_v4 = vmul.f32 %v2672_v59, %v2242_v2  ;;  %3013 = vmatprep.mubr.msk.f32.mxu0 %vm244_vm5, %v2253_v3 }
0x11da   :  { %v2254_v7 = vadd.f32 %v2673_v62, %v2248_v4 }
0x11dc   :  { %3014 = vmatmul.mubr.msk.f32.vlgmr.msra.gmra.mxu0 %vm244_vm5, %v2254_v7 }
0x11dd   :  { %3059 = vmatprep.mubr.msk.f32.mxu0 %vm3206_vm6, %v3203_v1  ;;  %3052 = vmatpush3.msra.mxu0 %v2464_v12 }
0x11de   :  { %3053 = vmatprep.subr.mxu0 %v3203_v1 }
0x11df   :  { %3054 = vmatpush3.msra.mxu0 %v2463_v32 }
0x11e0   :  { %3055 = vmatprep.subr.mxu0 %v3203_v1 }
0x11e1   :  { %3056 = vmatpush3.msra.mxu0 %v2462_v33 }
0x11e2   :  { %3057 = vmatprep.subr.mxu0 %v3203_v1 }
0x11e3   :  { %3058 = vmatpush3.msra.mxu0 %v2461_v34 }
0x129c   :  { %v3015_v14 = vpop.f32.mrf.mxu0 }
0x129d   :  { %v2337_v15 = vadd.f32 %v3015_v14, %v2674_v13 }
0x129e   :  { %v2331_v16 = vpop.f32.mrf.mxu0 }
0x129f   :  { %v2332_v17 = vadd.f32 %v2674_v13, %v2331_v16  ;;  %v2341_v19 = vmax.f32 %v2337_v15, 0.0 }
0x12a1   :  { %v2340_v18 = vmax.f32 %v2332_v17, 0.0 }
0x12a3   :  { %3048 = vmatprep.mubr.f32.mxu1 %v2340_v18 }
0x12a4   :  { %3049 = vmatmul.mubr.f32.vlgmr.msra.gmra.mxu1 %v2341_v19 }
0x1364   :  { %v3050_v21 = vpop.f32.mrf.mxu1 }
0x1365   :  { %v2418_v22 = vadd.f32 %v3050_v21, %v2677_v20 }
0x1366   :  { %v2412_v61 = vpop.f32.mrf.mxu1 }
0x1367   :  { %v2413_v5 = vadd.f32 %v2677_v20, %v2412_v61  ;;  %v2422_v23 = vadd.f32 %v2418_v22, %v2254_v7 }
0x1369   :  { %v2426_v24 = vsel %vm244_vm5, %v2422_v23, 0.0  ;;  %v2421_v55 = vadd.f32 %v2413_v5, %v2253_v3 }
0x136a   :  { %2427 = vadd.xlane.f32.xlu1 %v2426_v24 }
0x136b   :  { %v2423_v25 = vsel %vm244_vm5, %v2421_v55, 0.0 }
0x136c   :  { %2424 = vadd.xlane.f32.xlu0 %v2423_v25 }
0x13f3   :  { %v2428_v26 = vpop.xlane.xlu1 %2427 }
0x13f4   :  { %v2430_v27 = vmul.f32 0.03125, %v2428_v26 }
0x13f5   :  { %v2425_v28 = vpop.xlane.xlu0 %2424 }
0x13f6   :  { %v2432_v29 = vsub.f32 %v2422_v23, %v2430_v27  ;;  %v2429_v43 = vmul.f32 0.03125, %v2425_v28 }
0x13f8   :  { %v2431_v42 = vsub.f32 %v2421_v55, %v2429_v43  ;;  %v2434_v6 = vmul.f32 %v2432_v29, %v2432_v29 }
0x13fa   :  { %v2438_v58 = vsel %vm244_vm5, %v2434_v6, 0.0  ;;  %v2433_v57 = vmul.f32 %v2431_v42, %v2431_v42 }
0x13fb   :  { %2439 = vadd.xlane.f32.xlu1 %v2438_v58 }
0x13fc   :  { %v2435_v30 = vsel %vm244_vm5, %v2433_v57, 0.0 }
0x13fd   :  { %2436 = vadd.xlane.f32.xlu0 %v2435_v30 }
0x1484   :  { %v2440_v35 = vpop.xlane.xlu1 %2439 }
0x1485   :  { %v2442_v36 = vmul.f32 0.03125, %v2440_v35 }
0x1486   :  { %v2437_v37 = vpop.xlane.xlu0 %2436 }
0x1487   :  { %v2444_v38 = vadd.f32 1e-05, %v2442_v36  ;;  %v2441_v39 = vmul.f32 0.03125, %v2437_v37 }
0x1489   :  { %3122 = vrsqrt.f32 %v2444_v38  ;;  %v2443_v40 = vadd.f32 1e-05, %v2441_v39 }
0x148b   :  { %3124 = vrsqrt.f32 %v2443_v40 }
0x1496   :  { %v3123_v41 = vpop.eup %3122 }
0x1497   :  { %v2448_v46 = vmul.f32 %v3123_v41, %v2432_v29 }
0x1498   :  { %v3125_v49 = vpop.eup %3124 }
0x1499   :  { %v2447_v50 = vmul.f32 %v3125_v49, %v2431_v42  ;;  %v2454_v51 = vmul.f32 %v2678_v45, %v2448_v46 }
0x149b   :  { %v2453_v48 = vmul.f32 %v2678_v45, %v2447_v50  ;;  %v2460_v44 = vadd.f32 %v2679_v47, %v2454_v51 }
0x149d   :  { %v2459_v52 = vadd.f32 %v2679_v47, %v2453_v48  ;;  %v2467_v53 = vrot.slane %v2460_v44, 7 }
0x149f   :  { %v2469_v54 = vsel %vm2468_vm9, %v2467_v53, %v2459_v52 }
0x14a0   :  { %3060 = vmatmul.mubr.msk.f32.vlgmr.msra.gmra.mxu0 %vm244_vm5, %v2469_v54 }
0x1560   :  { %v2538_v56 = vpop.f32.mrf.mxu0 }
0x1561   :  { %v2543_v59 = vsel %vm2542_vm10, %v2538_v56, -inf }
0x1562   :  { %2544 = vmax.xlane.f32.xlu1 %v2543_v59  ;;  %v3061_v60 = vpop.f32.mrf.mxu0 }
0x15eb   :  { %v2545_v62 = vpop.xlane.xlu1 %2544 }
0x15ec   :  { %v2546_v63 = vsub.f32 %v2538_v56, %v2545_v62 }
0x15ee   :  { %v2547_v0 = vmul.f32 1.442695, %v2546_v63 }
0x15f0   :  { %3126 = vpow2.f32 %v2547_v0 }
0x15fd   :  { %v3127_v2 = vpop.eup %3126 }
0x15fe   :  { %v2549_v3 = vsel %vm2542_vm10, %v3127_v2, 0.0 }
0x15ff   :  { %2550 = vadd.xlane.f32.xlu0 %v2549_v3 }
0x1688   :  { %v2551_v4 = vpop.xlane.xlu0 %2550 }
0x1689   :  { %3128 = vrcp.f32 %v2551_v4 }
0x1696   :  { %v3129_v7 = vpop.eup %3128 }
0x1697   :  { %v2553_v8 = vmul.f32 %v3129_v7, %v3127_v2 }
0x1699   :  { %v2555_v9 = vsel %vm2542_vm10, %v2553_v8, -inf  ;;  %2554 = vst.msk [vmem:[#allocation5] sm:$0x3] %vm2542_vm10, %v2553_v8 }
0x169a   :  { %2556 = vmax.xlane.f32.xlu1 %v2555_v9 }
0x16ab   :  { %2570 = vperm.xlu1 %3076, %v2568_v10  }
0x1723   :  { %v2557_v13 = vpop.xlane.xlu1 %2556 }
0x1724   :  { %v2558_v14 = vsub.f32 %v2553_v8, %v2557_v13 }
0x1726   :  { %v2559_v15 = vmul.f32 1.442695, %v2558_v14 }
0x1727   :  { %v2571_v19 = vpop.permute.xlu1 %2570 }
0x1728   :  { %3130 = vpow2.f32 %v2559_v15  ;;  %vm2572_vm11 = vcmp.eq.s32.totalorder %v2571_v19, %v3304_v31 }
0x1729   :  { %v2681_v61 = vsel %vm2572_vm11, 1.0, %v3203_v1 }
0x1735   :  { %v3131_v16 = vpop.eup %3130 }
0x1736   :  { %v2561_v17 = vsel %vm2542_vm10, %v3131_v16, 0.0 }
0x1737   :  { %2562 = vadd.xlane.f32.xlu0 %v2561_v17 }
0x17c0   :  { %v2563_v18 = vpop.xlane.xlu0 %2562 }
0x17c1   :  { %3132 = vlog2.f32 %v2563_v18 }
0x17ce   :  { %v3133_v20 = vpop.eup %3132 }
0x17cf   :  { %v2565_v21 = vmul.f32 0.6931472, %v3133_v20 }
0x17d1   :  { %v2566_v22 = vadd.f32 %v2565_v21, %v2557_v13 }
0x17d3   :  { %v2567_v5 = vsub.f32 %v2553_v8, %v2566_v22 }
0x17d5   :  { %v2575_v23 = vmul.f32 %v2681_v61, %v2567_v5 }
0x17d7   :  { %v2576_v24 = vsel %vm2542_vm10, %v2575_v23, 0.0 }
0x17d8   :  { %2577 = vadd.xlane.f32.xlu0 %v2576_v24 }
0x17d9   :  { %3165 = shalt.err (!%p3162_p9)
}
0x17da   :  { %2599 = dma.vmem_to_hbm [thread:$0]  %s2597_s20, 32, %s3633_s5, [#allocation4]   ;;  %vm2588_vm12 = vcmask 0  }
0x17db   :  { %s3213_s24 = smov [#allocation6]  }
0x17dc   :  { %s2606_s25 = sshll.u32 %s3213_s24, 4  ;;  %s2607_s25 = int_to_ptr.vmem [resolvable:$true] %s2606_s25 }
0x17dd   :  { %s3174_s26 = scalar_lea.vmem %s2607_s25, 16  ;;  %s3178_s27 = scalar_lea.vmem %s2607_s25, 32 }
0x17de   :  { %p3175_p10 = scmp.ne.s32.totalorder %s2607_s25, %s3174_s26  ;;  %p3179_p11 = scmp.lt.s32.totalorder %s2607_s25, %s2607_s25 }
0x17df   :  { %p3180_p12 = scmp.lt.s32.totalorder %s3178_s27, %s3174_s26 }
0x17e1   :  { %p3181_p13 = por %p3180_p12, %p3179_p11 }
0x17e3   :  { %p3182_p0 = pnand %p3181_p13, %p3175_p10 }
0x1861   :  { %v2578_v1 = vpop.xlane.xlu0 %2577 }
0x1862   :  { %v2579_v31 = vsel %vm162_vm1, %v2578_v1, 0.0 }
0x1863   :  { %v2580_v55 = vrot.slane %v2579_v31, 4 }
0x1865   :  { %v2581_v25 = vadd.f32 %v2580_v55, %v2579_v31 }
0x1867   :  { %v2582_v26 = vrot.slane %v2581_v25, 2 }
0x1869   :  { %v2583_v27 = vadd.f32 %v2582_v26, %v2581_v25 }
0x186b   :  { %v2584_v28 = vrot.slane %v2583_v27, 1 }
0x186d   :  { %v2585_v29 = vadd.f32 %v2584_v28, %v2583_v27 }
0x186f   :  { %v2586_v43 = vsub.f32 0.0, %v2585_v29 }
0x1871   :  { %v2587_v42 = vmul.f32 0.5, %v2586_v43 }
0x1873   :  { %2589 = vst.msk [vmem:[#allocation6] sm:$0x1] %vm2588_vm12, %v2587_v42 }
0x1874   :  { %3185 = shalt.err (!%p3182_p0)
}
0x1875   :  { %2609 = dma.vmem_to_hbm [thread:$0]  %s2607_s25, 16, %s3634_s6, [#allocation7]  }
0x1876   :  { %3196 = dma.done.wait [#allocation4], 32  }
0x1877   :  { %3197 = vsyncadd [#allocation4], 4294967264 }
0x1878   :  { %3198 = dma.done.wait [#allocation7], 16  }
0x1879   :  { %3199 = vsyncadd [#allocation7], 4294967280 }
0x187a   :  { %2616 = vsyncpa [#allocation3], 1 }
0x187b   :  { %2617 = vsyncpa [#allocation4], 1 }
0x187c   :  { %2618 = vsyncpa [#allocation7], 1 }

</bundles_post_ra>
